<compile_context>
chip_gen: v6e
topology: v6e:2x2x1
jax: 0.10.0
libtpu: 0.0.40
codegen_flags: <defaults>
</compile_context>

<pallas_src>
import functools
import math

import jax
import jax.numpy as jnp
from jax import lax
from jax.experimental import pallas as pl
from jax.experimental.pallas import tpu as pltpu

MAX_ROW_TILE = 512                    # token-row tile cap for matmul/LN kernels
VMEM_LIMIT_BYTES = 56 * 1024 * 1024   # > default scoped limit, < v7x physical 64 MiB


def _row_tile(n, cap=MAX_ROW_TILE):
    """Full extent if small, else a fixed 8-aligned tile used with a cdiv grid."""
    return n if n <= cap else cap


def _pf_tile(pf, cap=512):
    """Largest multiple of 128 <= cap that divides pf (or pf itself if small)."""
    if pf <= cap:
        return pf
    for t in range(cap, 0, -128):
        if pf % t == 0:
            return t
    return pf  # TODO(synk): awkward pf_dim falls back to fully-resident FFN weights


# ----------------------------------------------------------------------------- kernels

def _softmax_ctx(q, k, v, m_ref, ctx_ref, attn_ref):
    """softmax(q k^T + mask_bias) @ v for one (batch, head) step.

    q is pre-scaled by 1/sqrt(D) (folded into the weights).  q/k/v are f32 here;
    matmul operands are cast to bf16, accumulation stays f32.
    """
    bias = (m_ref[...] - 1.0) * 1.0e10                       # (1, Lk); once per step
    energy = lax.dot_general(q.astype(jnp.bfloat16), k.astype(jnp.bfloat16),
                             (((1,), (1,)), ((), ())),        # NT contraction, no k.T
                             preferred_element_type=jnp.float32) + bias
    emax = jnp.max(energy, axis=-1, keepdims=True)
    p = jnp.exp(energy - emax)
    attn = p * pl.reciprocal(jnp.sum(p, axis=-1, keepdims=True), approx=True)
    attn_ref[...] = attn
    ctx = jnp.dot(attn.astype(jnp.bfloat16), v.astype(jnp.bfloat16),
                  preferred_element_type=jnp.float32)
    ctx_ref[...] = ctx.astype(ctx_ref.dtype)                 # bf16 intermediate


def _self_attn_kernel(x_ref, w_ref, bqkv_ref, m_ref, ctx_ref, attn_ref):
    # x: (Lq, Hd)  w: (3, Hd, D) bf16  bqkv: (3, 1, D)  m: (1, Lk)
    x = x_ref[...].astype(jnp.bfloat16)
    q = jnp.dot(x, w_ref[0], preferred_element_type=jnp.float32) + bqkv_ref[0]
    k = jnp.dot(x, w_ref[1], preferred_element_type=jnp.float32) + bqkv_ref[1]
    v = jnp.dot(x, w_ref[2], preferred_element_type=jnp.float32) + bqkv_ref[2]
    _softmax_ctx(q, k, v, m_ref, ctx_ref, attn_ref)


def _cross_attn_kernel(xq_ref, xkv_ref, wq_ref, bq_ref, wkv_ref, bkv_ref, m_ref,
                       ctx_ref, attn_ref):
    # xq: (Lq, Hd)  xkv: (Lk, Hd)  wq: (Hd, D)  wkv: (2, Hd, D)
    xq = xq_ref[...].astype(jnp.bfloat16)
    xkv = xkv_ref[...].astype(jnp.bfloat16)
    q = jnp.dot(xq, wq_ref[...], preferred_element_type=jnp.float32) + bq_ref[...]
    k = jnp.dot(xkv, wkv_ref[0], preferred_element_type=jnp.float32) + bkv_ref[0]
    v = jnp.dot(xkv, wkv_ref[1], preferred_element_type=jnp.float32) + bkv_ref[1]
    _softmax_ctx(q, k, v, m_ref, ctx_ref, attn_ref)


def _layernorm(y, g_ref, b_ref):
    mu = jnp.mean(y, axis=-1, keepdims=True)
    var = jnp.mean(jnp.square(y - mu), axis=-1, keepdims=True)
    return (y - mu) * lax.rsqrt(var + 1e-5) * g_ref[...] + b_ref[...]


def _make_oproj_ln_kernel(n_heads):
    def kernel(ctx_ref, res_ref, wo_ref, bo_ref, g_ref, b_ref, o_ref):
        # ctx: (H, lt, D) bf16   res: (lt, Hd) f32   wo: (H, D, Hd) bf16
        acc = res_ref[...] + bo_ref[...]
        for h in range(n_heads):  # per-head row-block matmuls == ctx @ wo (no permute)
            acc = acc + jnp.dot(ctx_ref[h], wo_ref[h],
                                preferred_element_type=jnp.float32)
        o_ref[...] = _layernorm(acc, g_ref, b_ref)
    return kernel


def _make_ffn_ln_kernel(pf_act):
    def kernel(x_ref, w1_ref, b1_ref, w2_ref, b2_ref, g_ref, b_ref, o_ref, acc_ref):
        k = pl.program_id(1)

        @pl.when(k == 0)
        def _():
            acc_ref[...] = x_ref[...] + b2_ref[...]          # residual + fc_2 bias

        x = x_ref[...].astype(jnp.bfloat16)
        h = jnp.dot(x, w1_ref[...], preferred_element_type=jnp.float32) + b1_ref[...]
        if pf_act == "relu":
            h = jnp.maximum(h, 0.0)
        else:  # 'gelu' (exact, matches torch.nn.functional.gelu default)
            h = jax.nn.gelu(h, approximate=False)
        acc_ref[...] += jnp.dot(h.astype(jnp.bfloat16), w2_ref[...],
                                preferred_element_type=jnp.float32)

        @pl.when(k == pl.num_programs(1) - 1)
        def _():
            o_ref[...] = _layernorm(acc_ref[...], g_ref, b_ref)
    return kernel


# ----------------------------------------------------------------------------- wrappers

def self_attention_core(trg, mask3, p, n_heads):
    """Fused per-head QKV projection + attention; grid = (batch, head)."""
    B, L, Hd = trg.shape
    D = Hd // n_heads
    return pl.pallas_call(
        _self_attn_kernel,
        grid=(B, n_heads),
        out_shape=(jax.ShapeDtypeStruct((B, n_heads, L, D), jnp.bfloat16),
                   jax.ShapeDtypeStruct((B, n_heads, L, L), jnp.float32)),
        in_specs=[
            pl.BlockSpec((None, L, Hd), lambda b, h: (b, 0, 0)),
            pl.BlockSpec((None, 3, Hd, D), lambda b, h: (h, 0, 0, 0)),
            pl.BlockSpec((None, 3, 1, D), lambda b, h: (h, 0, 0, 0)),
            pl.BlockSpec((None, 1, L), lambda b, h: (b, 0, 0)),
        ],
        out_specs=(
            pl.BlockSpec((None, None, L, D), lambda b, h: (b, h, 0, 0)),
            pl.BlockSpec((None, None, L, L), lambda b, h: (b, h, 0, 0)),
        ),
        compiler_params=pltpu.CompilerParams(
            dimension_semantics=("parallel", "parallel"),
            vmem_limit_bytes=VMEM_LIMIT_BYTES),
    )(trg, p["wqkv_h"], p["bqkv_h"], mask3)


def cross_attention_core(trg, enc_src, mask3, p, n_heads):
    """Fused per-head Q and K/V projections + attention; grid = (batch, head)."""
    B, Lq, Hd = trg.shape
    Lk = enc_src.shape[1]
    D = Hd // n_heads
    return pl.pallas_call(
        _cross_attn_kernel,
        grid=(B, n_heads),
        out_shape=(jax.ShapeDtypeStruct((B, n_heads, Lq, D), jnp.bfloat16),
                   jax.ShapeDtypeStruct((B, n_heads, Lq, Lk), jnp.float32)),
        in_specs=[
            pl.BlockSpec((None, Lq, Hd), lambda b, h: (b, 0, 0)),
            pl.BlockSpec((None, Lk, Hd), lambda b, h: (b, 0, 0)),
            pl.BlockSpec((None, Hd, D), lambda b, h: (h, 0, 0)),
            pl.BlockSpec((None, 1, D), lambda b, h: (h, 0, 0)),
            pl.BlockSpec((None, 2, Hd, D), lambda b, h: (h, 0, 0, 0)),
            pl.BlockSpec((None, 2, 1, D), lambda b, h: (h, 0, 0, 0)),
            pl.BlockSpec((None, 1, Lk), lambda b, h: (b, 0, 0)),
        ],
        out_specs=(
            pl.BlockSpec((None, None, Lq, D), lambda b, h: (b, h, 0, 0)),
            pl.BlockSpec((None, None, Lq, Lk), lambda b, h: (b, h, 0, 0)),
        ),
        compiler_params=pltpu.CompilerParams(
            dimension_semantics=("parallel", "parallel"),
            vmem_limit_bytes=VMEM_LIMIT_BYTES),
    )(trg, enc_src, p["wq_h"], p["bq_h"], p["wkv_h"], p["bkv_h"], mask3)


def oproj_ln(ctx_h, res, wo_h, bo, g, b, n_heads):
    """LayerNorm(res + fc_o(ctx))  — per-head context summed, no permute/reshape."""
    B, H, L, D = ctx_h.shape
    Hd = res.shape[-1]
    lt = _row_tile(L)
    return pl.pallas_call(
        _make_oproj_ln_kernel(n_heads),
        grid=(B, pl.cdiv(L, lt)),
        out_shape=jax.ShapeDtypeStruct((B, L, Hd), jnp.float32),
        in_specs=[
            pl.BlockSpec((None, H, lt, D), lambda bb, i: (bb, 0, i, 0)),
            pl.BlockSpec((None, lt, Hd), lambda bb, i: (bb, i, 0)),
            pl.BlockSpec((H, D, Hd), lambda bb, i: (0, 0, 0)),
            pl.BlockSpec((1, Hd), lambda bb, i: (0, 0)),
            pl.BlockSpec((1, Hd), lambda bb, i: (0, 0)),
            pl.BlockSpec((1, Hd), lambda bb, i: (0, 0)),
        ],
        out_specs=pl.BlockSpec((None, lt, Hd), lambda bb, i: (bb, i, 0)),
        compiler_params=pltpu.CompilerParams(
            dimension_semantics=("parallel", "parallel"),
            vmem_limit_bytes=VMEM_LIMIT_BYTES),
    )(ctx_h, res, wo_h, bo, g, b)


def ffn_ln(x, p, g, b, pf_act):
    """LayerNorm(x + FFN(x)) with the pf_dim axis K-tiled through an accumulator."""
    B, L, Hd = x.shape
    N = B * L
    Pf = p["w1"].shape[1]
    rt = _row_tile(N)
    Pk = _pf_tile(Pf)
    out = pl.pallas_call(
        _make_ffn_ln_kernel(pf_act),
        grid=(pl.cdiv(N, rt), Pf // Pk),
        out_shape=jax.ShapeDtypeStruct((N, Hd), jnp.float32),
        in_specs=[
            pl.BlockSpec((rt, Hd), lambda i, k: (i, 0)),
            pl.BlockSpec((Hd, Pk), lambda i, k: (0, k)),
            pl.BlockSpec((1, Pk), lambda i, k: (0, k)),
            pl.BlockSpec((Pk, Hd), lambda i, k: (k, 0)),
            pl.BlockSpec((1, Hd), lambda i, k: (0, 0)),
            pl.BlockSpec((1, Hd), lambda i, k: (0, 0)),
            pl.BlockSpec((1, Hd), lambda i, k: (0, 0)),
        ],
        out_specs=pl.BlockSpec((rt, Hd), lambda i, k: (i, 0)),
        scratch_shapes=[pltpu.VMEM((rt, Hd), jnp.float32)],
        compiler_params=pltpu.CompilerParams(
            dimension_semantics=("parallel", "arbitrary"),
            vmem_limit_bytes=VMEM_LIMIT_BYTES),
    )(x.reshape(N, Hd), p["w1"], p["b1"], p["w2"], p["b2"], g, b)
    return out.reshape(B, L, Hd)


@functools.partial(jax.jit, static_argnames=("n_heads", "pf_act"))
def decoder_layer(trg, enc_src, trg_mask, src_mask, prep, *, n_heads, pf_act):
    # dropout layers are identity (eval mode)
    B, Lq, Hd = trg.shape
    Lk = enc_src.shape[1]
    g, b = prep["ln_g"], prep["ln_b"]
    trg_mask3 = trg_mask.reshape(B, 1, Lq)
    src_mask3 = src_mask.reshape(B, 1, Lk)

    sa = prep["self_attn"]
    ctx, self_attention = self_attention_core(trg, trg_mask3, sa, n_heads)
    trg = oproj_ln(ctx, trg, sa["wo_h"], sa["bo"], g, b, n_heads)

    ea = prep["enc_attn"]
    ctx, encoder_attention = cross_attention_core(trg, enc_src, src_mask3, ea, n_heads)
    trg = oproj_ln(ctx, trg, ea["wo_h"], ea["bo"], g, b, n_heads)

    trg = ffn_ln(trg, prep["ffn"], g, b, pf_act)
    return trg, self_attention, encoder_attention


# ----------------------------------------------------------------------------- params

def init_params(key, hid_dim, pf_dim):
    """Canonical (PyTorch-layout) parameters; weights are [in, out]."""
    ks = jax.random.split(key, 24)
    s = 0.02
    it = iter(range(24))

    def w(din, dout):
        return s * jax.random.normal(ks[next(it)], (din, dout), jnp.float32)

    def bias(dout):
        return s * jax.random.normal(ks[next(it)], (1, dout), jnp.float32)

    def attn():
        return dict(wq=w(hid_dim, hid_dim), bq=bias(hid_dim),
                    wk=w(hid_dim, hid_dim), bk=bias(hid_dim),
                    wv=w(hid_dim, hid_dim), bv=bias(hid_dim),
                    wo=w(hid_dim, hid_dim), bo=bias(hid_dim))

    ffn = dict(w1=w(hid_dim, pf_dim), b1=bias(pf_dim),
               w2=w(pf_dim, hid_dim), b2=bias(hid_dim))
    return dict(self_attn=attn(), enc_attn=attn(), ffn=ffn,
                ln_g=jnp.ones((1, hid_dim), jnp.float32),
                ln_b=jnp.zeros((1, hid_dim), jnp.float32))


def prepare_params(params, n_heads):
    """One-time re-layout: per-head bf16 weights, 1/sqrt(D) folded into Q weights."""
    Hd = params["self_attn"]["wq"].shape[0]
    D = Hd // n_heads
    inv_scale = 1.0 / math.sqrt(D)

    def cols(w):      # (Hd, Hd) -> (H, Hd, D)  per-head column blocks
        return w.reshape(Hd, n_heads, D).transpose(1, 0, 2)

    def rows(w):      # (Hd, Hd) -> (H, D, Hd)  per-head row blocks (fc_o)
        return w.reshape(n_heads, D, Hd)

    def bh(bv):       # (1, Hd) -> (H, 1, D)
        return bv.reshape(n_heads, D)[:, None, :]

    sa = params["self_attn"]
    prep_sa = dict(
        wqkv_h=jnp.stack([cols(sa["wq"]) * inv_scale, cols(sa["wk"]), cols(sa["wv"])],
                         axis=1).astype(jnp.bfloat16),                 # (H,3,Hd,D)
        bqkv_h=jnp.stack([bh(sa["bq"]) * inv_scale, bh(sa["bk"]), bh(sa["bv"])],
                         axis=1).astype(jnp.float32),                  # (H,3,1,D)
        wo_h=rows(sa["wo"]).astype(jnp.bfloat16),                      # (H,D,Hd)
        bo=sa["bo"],
    )
    ea = params["enc_attn"]
    prep_ea = dict(
        wq_h=(cols(ea["wq"]) * inv_scale).astype(jnp.bfloat16),        # (H,Hd,D)
        bq_h=(bh(ea["bq"]) * inv_scale).astype(jnp.float32),           # (H,1,D)
        wkv_h=jnp.stack([cols(ea["wk"]), cols(ea["wv"])],
                        axis=1).astype(jnp.bfloat16),                  # (H,2,Hd,D)
        bkv_h=jnp.stack([bh(ea["bk"]), bh(ea["bv"])],
                        axis=1).astype(jnp.float32),                   # (H,2,1,D)
        wo_h=rows(ea["wo"]).astype(jnp.bfloat16),
        bo=ea["bo"],
    )
    f = params["ffn"]
    prep_ffn = dict(w1=f["w1"].astype(jnp.bfloat16), b1=f["b1"],
                    w2=f["w2"].astype(jnp.bfloat16), b2=f["b2"])
    return dict(self_attn=prep_sa, enc_attn=prep_ea, ffn=prep_ffn,
                ln_g=params["ln_g"], ln_b=params["ln_b"])


# ----------------------------------------------------------------------------- pure-JAX reference

def reference(trg, enc_src, trg_mask, src_mask, params, n_heads, pf_act):
    """Faithful f32 re-implementation of the PyTorch module (shared LayerNorm)."""
    Hd = trg.shape[-1]
    D = Hd // n_heads
    g, b = params["ln_g"], params["ln_b"]

    def ln(x):
        mu = x.mean(-1, keepdims=True)
        var = ((x - mu) ** 2).mean(-1, keepdims=True)
        return (x - mu) / jnp.sqrt(var + 1e-5) * g + b

    def mha(xq, xkv, mask, p):
        B, Lq, _ = xq.shape
        Lk = xkv.shape[1]
        q = (xq @ p["wq"] + p["bq"]).reshape(B, Lq, n_heads, D).transpose(0, 2, 1, 3)
        k = (xkv @ p["wk"] + p["bk"]).reshape(B, Lk, n_heads, D).transpose(0, 2, 1, 3)
        v = (xkv @ p["wv"] + p["bv"]).reshape(B, Lk, n_heads, D).transpose(0, 2, 1, 3)
        e = jnp.einsum("bhqd,bhkd->bhqk", q, k) / jnp.sqrt(jnp.float32(D))
        e = jnp.where(mask[:, None, None, :] == 0.0, -1.0e10, e)
        a = jax.nn.softmax(e, axis=-1)
        o = jnp.einsum("bhqk,bhkd->bhqd", a, v).transpose(0, 2, 1, 3).reshape(B, Lq, Hd)
        return o @ p["wo"] + p["bo"], a

    _trg, self_a = mha(trg, trg, trg_mask, params["self_attn"])
    trg = ln(trg + _trg)
    _trg, enc_a = mha(trg, enc_src, src_mask, params["enc_attn"])
    trg = ln(trg + _trg)
    f = params["ffn"]
    h = trg @ f["w1"] + f["b1"]
    h = jnp.maximum(h, 0.0) if pf_act == "relu" else jax.nn.gelu(h, approximate=False)
    trg = ln(trg + h @ f["w2"] + f["b2"])
    return trg, self_a, enc_a


# ----------------------------------------------------------------------------- main

if __name__ == "__main__":
    hid_dim, n_heads, pf_dim, pf_act = 32, 4, 64, "relu"
    B, trg_len, src_len = 2, 8, 16

    key = jax.random.PRNGKey(0)
    k_p, k_t, k_e = jax.random.split(key, 3)
    params = init_params(k_p, hid_dim, pf_dim)
    prep = prepare_params(params, n_heads)

    trg = jax.random.normal(k_t, (B, trg_len, hid_dim), jnp.float32)
    enc_src = jax.random.normal(k_e, (B, src_len, hid_dim), jnp.float32)

    # padding-style masks [batch, key_len]; 0 => masked (as in masked_fill(mask == 0))
    trg_mask = jnp.ones((B, trg_len), jnp.float32).at[1, -1].set(0.0)
    src_mask = jnp.ones((B, src_len), jnp.float32).at[1, -3:].set(0.0)

    out, self_attn, enc_attn = decoder_layer(
        trg, enc_src, trg_mask, src_mask, prep, n_heads=n_heads, pf_act=pf_act
    )
    jax.block_until_ready((out, self_attn, enc_attn))

    assert out.shape == (B, trg_len, hid_dim)
    assert self_attn.shape == (B, n_heads, trg_len, trg_len)
    assert enc_attn.shape == (B, n_heads, trg_len, src_len)
    assert bool(jnp.all(jnp.isfinite(out)))

    # correctness vs. full-f32 pure-JAX reference (kernel uses bf16 MXU operands,
    # f32 accumulation, so tolerances are a bit looser than pure-f32 parity).
    r_out, r_sa, r_ea = reference(trg, enc_src, trg_mask, src_mask, params,
                                  n_heads, pf_act)
    assert bool(jnp.allclose(out, r_out, atol=1e-2, rtol=1e-2))
    assert bool(jnp.allclose(self_attn, r_sa, atol=2e-3, rtol=1e-2))
    assert bool(jnp.allclose(enc_attn, r_ea, atol=2e-3, rtol=1e-2))

    print("KERNEL_OK")
</pallas_src>

<mosaic_0001>
module attributes {stable_mosaic.version = 11 : i64} {
  func.func @kernel(%arg0: i32, %arg1: i32, %arg2: memref<1x4x8x8xbf16, #tpu.memory_space<vmem>>, %arg3: memref<1x8x32xf32, #tpu.memory_space<vmem>>, %arg4: memref<4x8x32xbf16, #tpu.memory_space<vmem>>, %arg5: memref<1x32xf32, #tpu.memory_space<vmem>>, %arg6: memref<1x32xf32, #tpu.memory_space<vmem>>, %arg7: memref<1x32xf32, #tpu.memory_space<vmem>>, %arg8: memref<1x8x32xf32, #tpu.memory_space<vmem>>) attributes {dimension_semantics = [#tpu.dimension_semantics<parallel>, #tpu.dimension_semantics<parallel>], iteration_bounds = array<i64: 2, 1>, scalar_prefetch = 0 : i64, scratch_operands = 0 : i64, tpu.core_type = #tpu.core_type<tc>, window_params = [{transform_indices = @transform_0, window_bounds = array<i64: 1, 4, 8, 8>}, {transform_indices = @transform_1, window_bounds = array<i64: 1, 8, 32>}, {pipeline_mode = #tpu.pipeline_mode<synchronous>, transform_indices = @transform_2, window_bounds = array<i64: 4, 8, 32>}, {pipeline_mode = #tpu.pipeline_mode<synchronous>, transform_indices = @transform_3, window_bounds = array<i64: 1, 32>}, {pipeline_mode = #tpu.pipeline_mode<synchronous>, transform_indices = @transform_4, window_bounds = array<i64: 1, 32>}, {pipeline_mode = #tpu.pipeline_mode<synchronous>, transform_indices = @transform_5, window_bounds = array<i64: 1, 32>}, {transform_indices = @transform_6, window_bounds = array<i64: 1, 8, 32>}]} {
    %c0 = arith.constant 0 : index
    %c0_0 = arith.constant 0 : index
    %c0_1 = arith.constant 0 : index
    %0 = vector.load %arg3[%c0, %c0_0, %c0_1] : memref<1x8x32xf32, #tpu.memory_space<vmem>>, vector<1x8x32xf32>
    %1 = vector.shape_cast %0 : vector<1x8x32xf32> to vector<8x32xf32>
    %c0_2 = arith.constant 0 : index
    %c0_3 = arith.constant 0 : index
    %2 = vector.load %arg5[%c0_2, %c0_3] : memref<1x32xf32, #tpu.memory_space<vmem>>, vector<1x32xf32>
    %3 = vector.broadcast %2 : vector<1x32xf32> to vector<8x32xf32>
    %4 = arith.addf %1, %3 : vector<8x32xf32>
    %c0_4 = arith.constant 0 : index
    %c0_5 = arith.constant 0 : index
    %c0_6 = arith.constant 0 : index
    %c0_7 = arith.constant 0 : index
    %5 = vector.load %arg2[%c0_4, %c0_5, %c0_6, %c0_7] : memref<1x4x8x8xbf16, #tpu.memory_space<vmem>>, vector<1x1x8x8xbf16>
    %6 = vector.shape_cast %5 : vector<1x1x8x8xbf16> to vector<8x8xbf16>
    %c0_8 = arith.constant 0 : index
    %c0_9 = arith.constant 0 : index
    %c0_10 = arith.constant 0 : index
    %7 = vector.load %arg4[%c0_8, %c0_9, %c0_10] : memref<4x8x32xbf16, #tpu.memory_space<vmem>>, vector<1x8x32xbf16>
    %8 = vector.shape_cast %7 : vector<1x8x32xbf16> to vector<8x32xbf16>
    %cst = arith.constant dense<0.000000e+00> : vector<8x32xf32>
    %9 = tpu.matmul %6, %8, %cst {dimension_numbers = #tpu.dot_dimension_numbers<[1], [0], [0], [1], [0, 0, 1, 1], [], []>} : vector<8x8xbf16>, vector<8x32xbf16>, vector<8x32xf32> -> vector<8x32xf32>
    %10 = arith.addf %4, %9 : vector<8x32xf32>
    %c0_11 = arith.constant 0 : index
    %c1 = arith.constant 1 : index
    %c0_12 = arith.constant 0 : index
    %c0_13 = arith.constant 0 : index
    %11 = vector.load %arg2[%c0_11, %c1, %c0_12, %c0_13] : memref<1x4x8x8xbf16, #tpu.memory_space<vmem>>, vector<1x1x8x8xbf16>
    %12 = vector.shape_cast %11 : vector<1x1x8x8xbf16> to vector<8x8xbf16>
    %c1_14 = arith.constant 1 : index
    %c0_15 = arith.constant 0 : index
    %c0_16 = arith.constant 0 : index
    %13 = vector.load %arg4[%c1_14, %c0_15, %c0_16] : memref<4x8x32xbf16, #tpu.memory_space<vmem>>, vector<1x8x32xbf16>
    %14 = vector.shape_cast %13 : vector<1x8x32xbf16> to vector<8x32xbf16>
    %cst_17 = arith.constant dense<0.000000e+00> : vector<8x32xf32>
    %15 = tpu.matmul %12, %14, %cst_17 {dimension_numbers = #tpu.dot_dimension_numbers<[1], [0], [0], [1], [0, 0, 1, 1], [], []>} : vector<8x8xbf16>, vector<8x32xbf16>, vector<8x32xf32> -> vector<8x32xf32>
    %16 = arith.addf %10, %15 : vector<8x32xf32>
    %c0_18 = arith.constant 0 : index
    %c2 = arith.constant 2 : index
    %c0_19 = arith.constant 0 : index
    %c0_20 = arith.constant 0 : index
    %17 = vector.load %arg2[%c0_18, %c2, %c0_19, %c0_20] : memref<1x4x8x8xbf16, #tpu.memory_space<vmem>>, vector<1x1x8x8xbf16>
    %18 = vector.shape_cast %17 : vector<1x1x8x8xbf16> to vector<8x8xbf16>
    %c2_21 = arith.constant 2 : index
    %c0_22 = arith.constant 0 : index
    %c0_23 = arith.constant 0 : index
    %19 = vector.load %arg4[%c2_21, %c0_22, %c0_23] : memref<4x8x32xbf16, #tpu.memory_space<vmem>>, vector<1x8x32xbf16>
    %20 = vector.shape_cast %19 : vector<1x8x32xbf16> to vector<8x32xbf16>
    %cst_24 = arith.constant dense<0.000000e+00> : vector<8x32xf32>
    %21 = tpu.matmul %18, %20, %cst_24 {dimension_numbers = #tpu.dot_dimension_numbers<[1], [0], [0], [1], [0, 0, 1, 1], [], []>} : vector<8x8xbf16>, vector<8x32xbf16>, vector<8x32xf32> -> vector<8x32xf32>
    %22 = arith.addf %16, %21 : vector<8x32xf32>
    %c0_25 = arith.constant 0 : index
    %c3 = arith.constant 3 : index
    %c0_26 = arith.constant 0 : index
    %c0_27 = arith.constant 0 : index
    %23 = vector.load %arg2[%c0_25, %c3, %c0_26, %c0_27] : memref<1x4x8x8xbf16, #tpu.memory_space<vmem>>, vector<1x1x8x8xbf16>
    %24 = vector.shape_cast %23 : vector<1x1x8x8xbf16> to vector<8x8xbf16>
    %c3_28 = arith.constant 3 : index
    %c0_29 = arith.constant 0 : index
    %c0_30 = arith.constant 0 : index
    %25 = vector.load %arg4[%c3_28, %c0_29, %c0_30] : memref<4x8x32xbf16, #tpu.memory_space<vmem>>, vector<1x8x32xbf16>
    %26 = vector.shape_cast %25 : vector<1x8x32xbf16> to vector<8x32xbf16>
    %cst_31 = arith.constant dense<0.000000e+00> : vector<8x32xf32>
    %27 = tpu.matmul %24, %26, %cst_31 {dimension_numbers = #tpu.dot_dimension_numbers<[1], [0], [0], [1], [0, 0, 1, 1], [], []>} : vector<8x8xbf16>, vector<8x32xbf16>, vector<8x32xf32> -> vector<8x32xf32>
    %28 = arith.addf %22, %27 : vector<8x32xf32>
    %cst_32 = arith.constant dense<0.000000e+00> : vector<8xf32>
    %29 = vector.multi_reduction <add>, %28, %cst_32 [1] : vector<8x32xf32> to vector<8xf32>
    %30 = vector.shape_cast %29 : vector<8xf32> to vector<8x1xf32>
    %cst_33 = arith.constant 3.200000e+01 : f32
    %31 = vector.broadcast %cst_33 : f32 to vector<8x1xf32>
    %32 = arith.divf %30, %31 : vector<8x1xf32>
    %33 = vector.broadcast %32 : vector<8x1xf32> to vector<8x32xf32>
    %34 = arith.subf %28, %33 : vector<8x32xf32>
    %35 = arith.mulf %34, %34 : vector<8x32xf32>
    %cst_34 = arith.constant dense<0.000000e+00> : vector<8xf32>
    %36 = vector.multi_reduction <add>, %35, %cst_34 [1] : vector<8x32xf32> to vector<8xf32>
    %37 = vector.shape_cast %36 : vector<8xf32> to vector<8x1xf32>
    %cst_35 = arith.constant 3.200000e+01 : f32
    %38 = vector.broadcast %cst_35 : f32 to vector<8x1xf32>
    %39 = arith.divf %37, %38 : vector<8x1xf32>
    %40 = vector.broadcast %32 : vector<8x1xf32> to vector<8x32xf32>
    %41 = arith.subf %28, %40 : vector<8x32xf32>
    %cst_36 = arith.constant 9.99999974E-6 : f32
    %42 = vector.broadcast %cst_36 : f32 to vector<8x1xf32>
    %43 = arith.addf %39, %42 : vector<8x1xf32>
    %44 = math.rsqrt %43 : vector<8x1xf32>
    %45 = vector.broadcast %44 : vector<8x1xf32> to vector<8x32xf32>
    %46 = arith.mulf %41, %45 : vector<8x32xf32>
    %c0_37 = arith.constant 0 : index
    %c0_38 = arith.constant 0 : index
    %47 = vector.load %arg6[%c0_37, %c0_38] : memref<1x32xf32, #tpu.memory_space<vmem>>, vector<1x32xf32>
    %48 = vector.broadcast %47 : vector<1x32xf32> to vector<8x32xf32>
    %49 = arith.mulf %46, %48 : vector<8x32xf32>
    %c0_39 = arith.constant 0 : index
    %c0_40 = arith.constant 0 : index
    %50 = vector.load %arg7[%c0_39, %c0_40] : memref<1x32xf32, #tpu.memory_space<vmem>>, vector<1x32xf32>
    %51 = vector.broadcast %50 : vector<1x32xf32> to vector<8x32xf32>
    %52 = arith.addf %49, %51 : vector<8x32xf32>
    %c0_41 = arith.constant 0 : index
    %c0_42 = arith.constant 0 : index
    %c0_43 = arith.constant 0 : index
    %53 = vector.load %arg8[%c0_41, %c0_42, %c0_43] : memref<1x8x32xf32, #tpu.memory_space<vmem>>, vector<1x8x32xf32>
    %54 = vector.shape_cast %53 : vector<1x8x32xf32> to vector<8x32xf32>
    %55 = vector.shape_cast %52 : vector<8x32xf32> to vector<1x8x32xf32>
    tpu.vector_store %arg8[%c0_41, %c0_42, %c0_43], %55 {strides = array<i32>} : memref<1x8x32xf32, #tpu.memory_space<vmem>>, vector<1x8x32xf32>,
    return
  }
  func.func @transform_0(%arg0: i32, %arg1: i32) -> (i32, i32, i32, i32) {
    %c0_i32 = arith.constant 0 : i32
    %c0_i32_0 = arith.constant 0 : i32
    %c0_i32_1 = arith.constant 0 : i32
    return %arg0, %c0_i32, %arg1, %c0_i32_0 : i32, i32, i32, i32
  }
  func.func @transform_1(%arg0: i32, %arg1: i32) -> (i32, i32, i32) {
    %c0_i32 = arith.constant 0 : i32
    %c0_i32_0 = arith.constant 0 : i32
    return %arg0, %arg1, %c0_i32 : i32, i32, i32
  }
  func.func @transform_2(%arg0: i32, %arg1: i32) -> (i32, i32, i32) {
    %c0_i32 = arith.constant 0 : i32
    %c0_i32_0 = arith.constant 0 : i32
    %c0_i32_1 = arith.constant 0 : i32
    %c0_i32_2 = arith.constant 0 : i32
    return %c0_i32, %c0_i32_0, %c0_i32_1 : i32, i32, i32
  }
  func.func @transform_3(%arg0: i32, %arg1: i32) -> (i32, i32) {
    %c0_i32 = arith.constant 0 : i32
    %c0_i32_0 = arith.constant 0 : i32
    %c0_i32_1 = arith.constant 0 : i32
    return %c0_i32, %c0_i32_0 : i32, i32
  }
  func.func @transform_4(%arg0: i32, %arg1: i32) -> (i32, i32) {
    %c0_i32 = arith.constant 0 : i32
    %c0_i32_0 = arith.constant 0 : i32
    %c0_i32_1 = arith.constant 0 : i32
    return %c0_i32, %c0_i32_0 : i32, i32
  }
  func.func @transform_5(%arg0: i32, %arg1: i32) -> (i32, i32) {
    %c0_i32 = arith.constant 0 : i32
    %c0_i32_0 = arith.constant 0 : i32
    %c0_i32_1 = arith.constant 0 : i32
    return %c0_i32, %c0_i32_0 : i32, i32
  }
  func.func @transform_6(%arg0: i32, %arg1: i32) -> (i32, i32, i32) {
    %c0_i32 = arith.constant 0 : i32
    %c0_i32_0 = arith.constant 0 : i32
    return %arg0, %arg1, %c0_i32 : i32, i32, i32
  }
}

module attributes {stable_mosaic.version = 11 : i64} {
  func.func @_self_attn_kernel(%arg0: i32, %arg1: i32, %arg2: memref<1x8x32xf32, #tpu.memory_space<vmem>>, %arg3: memref<1x3x32x8xbf16, #tpu.memory_space<vmem>>, %arg4: memref<1x3x1x8xf32, #tpu.memory_space<vmem>>, %arg5: memref<1x1x8xf32, #tpu.memory_space<vmem>>, %arg6: memref<1x1x8x8xbf16, #tpu.memory_space<vmem>>, %arg7: memref<1x1x8x8xf32, #tpu.memory_space<vmem>>) attributes {dimension_semantics = [#tpu.dimension_semantics<parallel>, #tpu.dimension_semantics<parallel>], iteration_bounds = array<i64: 2, 4>, scalar_prefetch = 0 : i64, scratch_operands = 0 : i64, tpu.core_type = #tpu.core_type<tc>, window_params = [{transform_indices = @transform_0, window_bounds = array<i64: 1, 8, 32>}, {transform_indices = @transform_1, window_bounds = array<i64: 1, 3, 32, 8>}, {transform_indices = @transform_2, window_bounds = array<i64: 1, 3, 1, 8>}, {transform_indices = @transform_3, window_bounds = array<i64: 1, 1, 8>}, {transform_indices = @transform_4, window_bounds = array<i64: 1, 1, 8, 8>}, {transform_indices = @transform_5, window_bounds = array<i64: 1, 1, 8, 8>}]} {
    %c0 = arith.constant 0 : index
    %c0_0 = arith.constant 0 : index
    %c0_1 = arith.constant 0 : index
    %0 = vector.load %arg2[%c0, %c0_0, %c0_1] : memref<1x8x32xf32, #tpu.memory_space<vmem>>, vector<1x8x32xf32>
    %1 = vector.shape_cast %0 : vector<1x8x32xf32> to vector<8x32xf32>
    %2 = arith.truncf %1 : vector<8x32xf32> to vector<8x32xbf16>
    %c0_2 = arith.constant 0 : index
    %c0_3 = arith.constant 0 : index
    %c0_4 = arith.constant 0 : index
    %c0_5 = arith.constant 0 : index
    %3 = vector.load %arg3[%c0_2, %c0_3, %c0_4, %c0_5] : memref<1x3x32x8xbf16, #tpu.memory_space<vmem>>, vector<1x1x32x8xbf16>
    %4 = vector.shape_cast %3 : vector<1x1x32x8xbf16> to vector<32x8xbf16>
    %cst = arith.constant dense<0.000000e+00> : vector<8x8xf32>
    %5 = tpu.matmul %2, %4, %cst {dimension_numbers = #tpu.dot_dimension_numbers<[1], [0], [0], [1], [0, 0, 1, 1], [], []>} : vector<8x32xbf16>, vector<32x8xbf16>, vector<8x8xf32> -> vector<8x8xf32>
    %c0_6 = arith.constant 0 : index
    %c0_7 = arith.constant 0 : index
    %c0_8 = arith.constant 0 : index
    %c0_9 = arith.constant 0 : index
    %6 = vector.load %arg4[%c0_6, %c0_7, %c0_8, %c0_9] : memref<1x3x1x8xf32, #tpu.memory_space<vmem>>, vector<1x1x1x8xf32>
    %7 = vector.shape_cast %6 : vector<1x1x1x8xf32> to vector<1x8xf32>
    %8 = vector.broadcast %7 : vector<1x8xf32> to vector<8x8xf32>
    %9 = arith.addf %5, %8 : vector<8x8xf32>
    %c0_10 = arith.constant 0 : index
    %c1 = arith.constant 1 : index
    %c0_11 = arith.constant 0 : index
    %c0_12 = arith.constant 0 : index
    %10 = vector.load %arg3[%c0_10, %c1, %c0_11, %c0_12] : memref<1x3x32x8xbf16, #tpu.memory_space<vmem>>, vector<1x1x32x8xbf16>
    %11 = vector.shape_cast %10 : vector<1x1x32x8xbf16> to vector<32x8xbf16>
    %cst_13 = arith.constant dense<0.000000e+00> : vector<8x8xf32>
    %12 = tpu.matmul %2, %11, %cst_13 {dimension_numbers = #tpu.dot_dimension_numbers<[1], [0], [0], [1], [0, 0, 1, 1], [], []>} : vector<8x32xbf16>, vector<32x8xbf16>, vector<8x8xf32> -> vector<8x8xf32>
    %c0_14 = arith.constant 0 : index
    %c1_15 = arith.constant 1 : index
    %c0_16 = arith.constant 0 : index
    %c0_17 = arith.constant 0 : index
    %13 = vector.load %arg4[%c0_14, %c1_15, %c0_16, %c0_17] : memref<1x3x1x8xf32, #tpu.memory_space<vmem>>, vector<1x1x1x8xf32>
    %14 = vector.shape_cast %13 : vector<1x1x1x8xf32> to vector<1x8xf32>
    %15 = vector.broadcast %14 : vector<1x8xf32> to vector<8x8xf32>
    %16 = arith.addf %12, %15 : vector<8x8xf32>
    %c0_18 = arith.constant 0 : index
    %c2 = arith.constant 2 : index
    %c0_19 = arith.constant 0 : index
    %c0_20 = arith.constant 0 : index
    %17 = vector.load %arg3[%c0_18, %c2, %c0_19, %c0_20] : memref<1x3x32x8xbf16, #tpu.memory_space<vmem>>, vector<1x1x32x8xbf16>
    %18 = vector.shape_cast %17 : vector<1x1x32x8xbf16> to vector<32x8xbf16>
    %cst_21 = arith.constant dense<0.000000e+00> : vector<8x8xf32>
    %19 = tpu.matmul %2, %18, %cst_21 {dimension_numbers = #tpu.dot_dimension_numbers<[1], [0], [0], [1], [0, 0, 1, 1], [], []>} : vector<8x32xbf16>, vector<32x8xbf16>, vector<8x8xf32> -> vector<8x8xf32>
    %c0_22 = arith.constant 0 : index
    %c2_23 = arith.constant 2 : index
    %c0_24 = arith.constant 0 : index
    %c0_25 = arith.constant 0 : index
    %20 = vector.load %arg4[%c0_22, %c2_23, %c0_24, %c0_25] : memref<1x3x1x8xf32, #tpu.memory_space<vmem>>, vector<1x1x1x8xf32>
    %21 = vector.shape_cast %20 : vector<1x1x1x8xf32> to vector<1x8xf32>
    %22 = vector.broadcast %21 : vector<1x8xf32> to vector<8x8xf32>
    %23 = arith.addf %19, %22 : vector<8x8xf32>
    %c0_26 = arith.constant 0 : index
    %c0_27 = arith.constant 0 : index
    %c0_28 = arith.constant 0 : index
    %24 = vector.load %arg5[%c0_26, %c0_27, %c0_28] : memref<1x1x8xf32, #tpu.memory_space<vmem>>, vector<1x1x8xf32>
    %25 = vector.shape_cast %24 : vector<1x1x8xf32> to vector<1x8xf32>
    %cst_29 = arith.constant 1.000000e+00 : f32
    %26 = vector.broadcast %cst_29 : f32 to vector<1x8xf32>
    %27 = arith.subf %25, %26 : vector<1x8xf32>
    %cst_30 = arith.constant 1.000000e+10 : f32
    %28 = vector.broadcast %cst_30 : f32 to vector<1x8xf32>
    %29 = arith.mulf %27, %28 : vector<1x8xf32>
    %30 = arith.truncf %9 : vector<8x8xf32> to vector<8x8xbf16>
    %31 = arith.truncf %16 : vector<8x8xf32> to vector<8x8xbf16>
    %cst_31 = arith.constant dense<0.000000e+00> : vector<8x8xf32>
    %32 = tpu.matmul %30, %31, %cst_31 {dimension_numbers = #tpu.dot_dimension_numbers<[1], [1], [0], [0], [0, 0, 1, 0], [], []>} : vector<8x8xbf16>, vector<8x8xbf16>, vector<8x8xf32> -> vector<8x8xf32>
    %33 = vector.broadcast %29 : vector<1x8xf32> to vector<8x8xf32>
    %34 = arith.addf %32, %33 : vector<8x8xf32>
    %cst_32 = arith.constant dense<0xFF800000> : vector<8xf32>
    %35 = vector.multi_reduction <maximumf>, %34, %cst_32 [1] : vector<8x8xf32> to vector<8xf32>
    %36 = vector.shape_cast %35 : vector<8xf32> to vector<8x1xf32>
    %37 = vector.broadcast %36 : vector<8x1xf32> to vector<8x8xf32>
    %38 = arith.subf %34, %37 : vector<8x8xf32>
    %39 = math.exp %38 : vector<8x8xf32>
    %cst_33 = arith.constant dense<0.000000e+00> : vector<8xf32>
    %40 = vector.multi_reduction <add>, %39, %cst_33 [1] : vector<8x8xf32> to vector<8xf32>
    %41 = vector.shape_cast %40 : vector<8xf32> to vector<8x1xf32>
    %42 = tpu.reciprocal %41 {approx = true} : vector<8x1xf32> -> vector<8x1xf32>
    %43 = vector.broadcast %42 : vector<8x1xf32> to vector<8x8xf32>
    %44 = arith.mulf %39, %43 : vector<8x8xf32>
    %c0_34 = arith.constant 0 : index
    %c0_35 = arith.constant 0 : index
    %c0_36 = arith.constant 0 : index
    %c0_37 = arith.constant 0 : index
    %45 = vector.load %arg7[%c0_34, %c0_35, %c0_36, %c0_37] : memref<1x1x8x8xf32, #tpu.memory_space<vmem>>, vector<1x1x8x8xf32>
    %46 = vector.shape_cast %45 : vector<1x1x8x8xf32> to vector<8x8xf32>
    %47 = vector.shape_cast %44 : vector<8x8xf32> to vector<1x1x8x8xf32>
    tpu.vector_store %arg7[%c0_34, %c0_35, %c0_36, %c0_37], %47 {strides = array<i32>} : memref<1x1x8x8xf32, #tpu.memory_space<vmem>>, vector<1x1x8x8xf32>,
    %48 = arith.truncf %44 : vector<8x8xf32> to vector<8x8xbf16>
    %49 = arith.truncf %23 : vector<8x8xf32> to vector<8x8xbf16>
    %cst_38 = arith.constant dense<0.000000e+00> : vector<8x8xf32>
    %50 = tpu.matmul %48, %49, %cst_38 {dimension_numbers = #tpu.dot_dimension_numbers<[1], [0], [0], [1], [0, 0, 1, 1], [], []>} : vector<8x8xbf16>, vector<8x8xbf16>, vector<8x8xf32> -> vector<8x8xf32>
    %51 = arith.truncf %50 : vector<8x8xf32> to vector<8x8xbf16>
    %c0_39 = arith.constant 0 : index
    %c0_40 = arith.constant 0 : index
    %c0_41 = arith.constant 0 : index
    %c0_42 = arith.constant 0 : index
    %52 = vector.load %arg6[%c0_39, %c0_40, %c0_41, %c0_42] : memref<1x1x8x8xbf16, #tpu.memory_space<vmem>>, vector<1x1x8x8xbf16>
    %53 = vector.shape_cast %52 : vector<1x1x8x8xbf16> to vector<8x8xbf16>
    %54 = vector.shape_cast %51 : vector<8x8xbf16> to vector<1x1x8x8xbf16>
    tpu.vector_store %arg6[%c0_39, %c0_40, %c0_41, %c0_42], %54 {strides = array<i32>} : memref<1x1x8x8xbf16, #tpu.memory_space<vmem>>, vector<1x1x8x8xbf16>,
    return
  }
  func.func @transform_0(%arg0: i32, %arg1: i32) -> (i32, i32, i32) {
    %c0_i32 = arith.constant 0 : i32
    %c0_i32_0 = arith.constant 0 : i32
    %c0_i32_1 = arith.constant 0 : i32
    return %arg0, %c0_i32, %c0_i32_0 : i32, i32, i32
  }
  func.func @transform_1(%arg0: i32, %arg1: i32) -> (i32, i32, i32, i32) {
    %c0_i32 = arith.constant 0 : i32
    %c0_i32_0 = arith.constant 0 : i32
    %c0_i32_1 = arith.constant 0 : i32
    %c0_i32_2 = arith.constant 0 : i32
    return %arg1, %c0_i32, %c0_i32_0, %c0_i32_1 : i32, i32, i32, i32
  }
  func.func @transform_2(%arg0: i32, %arg1: i32) -> (i32, i32, i32, i32) {
    %c0_i32 = arith.constant 0 : i32
    %c0_i32_0 = arith.constant 0 : i32
    %c0_i32_1 = arith.constant 0 : i32
    %c0_i32_2 = arith.constant 0 : i32
    return %arg1, %c0_i32, %c0_i32_0, %c0_i32_1 : i32, i32, i32, i32
  }
  func.func @transform_3(%arg0: i32, %arg1: i32) -> (i32, i32, i32) {
    %c0_i32 = arith.constant 0 : i32
    %c0_i32_0 = arith.constant 0 : i32
    %c0_i32_1 = arith.constant 0 : i32
    return %arg0, %c0_i32, %c0_i32_0 : i32, i32, i32
  }
  func.func @transform_4(%arg0: i32, %arg1: i32) -> (i32, i32, i32, i32) {
    %c0_i32 = arith.constant 0 : i32
    %c0_i32_0 = arith.constant 0 : i32
    %c0_i32_1 = arith.constant 0 : i32
    return %arg0, %arg1, %c0_i32, %c0_i32_0 : i32, i32, i32, i32
  }
  func.func @transform_5(%arg0: i32, %arg1: i32) -> (i32, i32, i32, i32) {
    %c0_i32 = arith.constant 0 : i32
    %c0_i32_0 = arith.constant 0 : i32
    %c0_i32_1 = arith.constant 0 : i32
    return %arg0, %arg1, %c0_i32, %c0_i32_0 : i32, i32, i32, i32
  }
}

module attributes {stable_mosaic.version = 11 : i64} {
  func.func @_cross_attn_kernel(%arg0: i32, %arg1: i32, %arg2: memref<1x8x32xf32, #tpu.memory_space<vmem>>, %arg3: memref<1x16x32xf32, #tpu.memory_space<vmem>>, %arg4: memref<1x32x8xbf16, #tpu.memory_space<vmem>>, %arg5: memref<1x1x8xf32, #tpu.memory_space<vmem>>, %arg6: memref<1x2x32x8xbf16, #tpu.memory_space<vmem>>, %arg7: memref<1x2x1x8xf32, #tpu.memory_space<vmem>>, %arg8: memref<1x1x16xf32, #tpu.memory_space<vmem>>, %arg9: memref<1x1x8x8xbf16, #tpu.memory_space<vmem>>, %arg10: memref<1x1x8x16xf32, #tpu.memory_space<vmem>>) attributes {dimension_semantics = [#tpu.dimension_semantics<parallel>, #tpu.dimension_semantics<parallel>], iteration_bounds = array<i64: 2, 4>, scalar_prefetch = 0 : i64, scratch_operands = 0 : i64, tpu.core_type = #tpu.core_type<tc>, window_params = [{transform_indices = @transform_0, window_bounds = array<i64: 1, 8, 32>}, {transform_indices = @transform_1, window_bounds = array<i64: 1, 16, 32>}, {transform_indices = @transform_2, window_bounds = array<i64: 1, 32, 8>}, {transform_indices = @transform_3, window_bounds = array<i64: 1, 1, 8>}, {transform_indices = @transform_4, window_bounds = array<i64: 1, 2, 32, 8>}, {transform_indices = @transform_5, window_bounds = array<i64: 1, 2, 1, 8>}, {transform_indices = @transform_6, window_bounds = array<i64: 1, 1, 16>}, {transform_indices = @transform_7, window_bounds = array<i64: 1, 1, 8, 8>}, {transform_indices = @transform_8, window_bounds = array<i64: 1, 1, 8, 16>}]} {
    %c0 = arith.constant 0 : index
    %c0_0 = arith.constant 0 : index
    %c0_1 = arith.constant 0 : index
    %0 = vector.load %arg2[%c0, %c0_0, %c0_1] : memref<1x8x32xf32, #tpu.memory_space<vmem>>, vector<1x8x32xf32>
    %1 = vector.shape_cast %0 : vector<1x8x32xf32> to vector<8x32xf32>
    %2 = arith.truncf %1 : vector<8x32xf32> to vector<8x32xbf16>
    %c0_2 = arith.constant 0 : index
    %c0_3 = arith.constant 0 : index
    %c0_4 = arith.constant 0 : index
    %3 = vector.load %arg3[%c0_2, %c0_3, %c0_4] : memref<1x16x32xf32, #tpu.memory_space<vmem>>, vector<1x16x32xf32>
    %4 = vector.shape_cast %3 : vector<1x16x32xf32> to vector<16x32xf32>
    %5 = arith.truncf %4 : vector<16x32xf32> to vector<16x32xbf16>
    %c0_5 = arith.constant 0 : index
    %c0_6 = arith.constant 0 : index
    %c0_7 = arith.constant 0 : index
    %6 = vector.load %arg4[%c0_5, %c0_6, %c0_7] : memref<1x32x8xbf16, #tpu.memory_space<vmem>>, vector<1x32x8xbf16>
    %7 = vector.shape_cast %6 : vector<1x32x8xbf16> to vector<32x8xbf16>
    %cst = arith.constant dense<0.000000e+00> : vector<8x8xf32>
    %8 = tpu.matmul %2, %7, %cst {dimension_numbers = #tpu.dot_dimension_numbers<[1], [0], [0], [1], [0, 0, 1, 1], [], []>} : vector<8x32xbf16>, vector<32x8xbf16>, vector<8x8xf32> -> vector<8x8xf32>
    %c0_8 = arith.constant 0 : index
    %c0_9 = arith.constant 0 : index
    %c0_10 = arith.constant 0 : index
    %9 = vector.load %arg5[%c0_8, %c0_9, %c0_10] : memref<1x1x8xf32, #tpu.memory_space<vmem>>, vector<1x1x8xf32>
    %10 = vector.shape_cast %9 : vector<1x1x8xf32> to vector<1x8xf32>
    %11 = vector.broadcast %10 : vector<1x8xf32> to vector<8x8xf32>
    %12 = arith.addf %8, %11 : vector<8x8xf32>
    %c0_11 = arith.constant 0 : index
    %c0_12 = arith.constant 0 : index
    %c0_13 = arith.constant 0 : index
    %c0_14 = arith.constant 0 : index
    %13 = vector.load %arg6[%c0_11, %c0_12, %c0_13, %c0_14] : memref<1x2x32x8xbf16, #tpu.memory_space<vmem>>, vector<1x1x32x8xbf16>
    %14 = vector.shape_cast %13 : vector<1x1x32x8xbf16> to vector<32x8xbf16>
    %cst_15 = arith.constant dense<0.000000e+00> : vector<16x8xf32>
    %15 = tpu.matmul %5, %14, %cst_15 {dimension_numbers = #tpu.dot_dimension_numbers<[1], [0], [0], [1], [0, 0, 1, 1], [], []>} : vector<16x32xbf16>, vector<32x8xbf16>, vector<16x8xf32> -> vector<16x8xf32>
    %c0_16 = arith.constant 0 : index
    %c0_17 = arith.constant 0 : index
    %c0_18 = arith.constant 0 : index
    %c0_19 = arith.constant 0 : index
    %16 = vector.load %arg7[%c0_16, %c0_17, %c0_18, %c0_19] : memref<1x2x1x8xf32, #tpu.memory_space<vmem>>, vector<1x1x1x8xf32>
    %17 = vector.shape_cast %16 : vector<1x1x1x8xf32> to vector<1x8xf32>
    %18 = vector.broadcast %17 : vector<1x8xf32> to vector<16x8xf32>
    %19 = arith.addf %15, %18 : vector<16x8xf32>
    %c0_20 = arith.constant 0 : index
    %c1 = arith.constant 1 : index
    %c0_21 = arith.constant 0 : index
    %c0_22 = arith.constant 0 : index
    %20 = vector.load %arg6[%c0_20, %c1, %c0_21, %c0_22] : memref<1x2x32x8xbf16, #tpu.memory_space<vmem>>, vector<1x1x32x8xbf16>
    %21 = vector.shape_cast %20 : vector<1x1x32x8xbf16> to vector<32x8xbf16>
    %cst_23 = arith.constant dense<0.000000e+00> : vector<16x8xf32>
    %22 = tpu.matmul %5, %21, %cst_23 {dimension_numbers = #tpu.dot_dimension_numbers<[1], [0], [0], [1], [0, 0, 1, 1], [], []>} : vector<16x32xbf16>, vector<32x8xbf16>, vector<16x8xf32> -> vector<16x8xf32>
    %c0_24 = arith.constant 0 : index
    %c1_25 = arith.constant 1 : index
    %c0_26 = arith.constant 0 : index
    %c0_27 = arith.constant 0 : index
    %23 = vector.load %arg7[%c0_24, %c1_25, %c0_26, %c0_27] : memref<1x2x1x8xf32, #tpu.memory_space<vmem>>, vector<1x1x1x8xf32>
    %24 = vector.shape_cast %23 : vector<1x1x1x8xf32> to vector<1x8xf32>
    %25 = vector.broadcast %24 : vector<1x8xf32> to vector<16x8xf32>
    %26 = arith.addf %22, %25 : vector<16x8xf32>
    %c0_28 = arith.constant 0 : index
    %c0_29 = arith.constant 0 : index
    %c0_30 = arith.constant 0 : index
    %27 = vector.load %arg8[%c0_28, %c0_29, %c0_30] : memref<1x1x16xf32, #tpu.memory_space<vmem>>, vector<1x1x16xf32>
    %28 = vector.shape_cast %27 : vector<1x1x16xf32> to vector<1x16xf32>
    %cst_31 = arith.constant 1.000000e+00 : f32
    %29 = vector.broadcast %cst_31 : f32 to vector<1x16xf32>
    %30 = arith.subf %28, %29 : vector<1x16xf32>
    %cst_32 = arith.constant 1.000000e+10 : f32
    %31 = vector.broadcast %cst_32 : f32 to vector<1x16xf32>
    %32 = arith.mulf %30, %31 : vector<1x16xf32>
    %33 = arith.truncf %12 : vector<8x8xf32> to vector<8x8xbf16>
    %34 = arith.truncf %19 : vector<16x8xf32> to vector<16x8xbf16>
    %cst_33 = arith.constant dense<0.000000e+00> : vector<8x16xf32>
    %35 = tpu.matmul %33, %34, %cst_33 {dimension_numbers = #tpu.dot_dimension_numbers<[1], [1], [0], [0], [0, 0, 1, 0], [], []>} : vector<8x8xbf16>, vector<16x8xbf16>, vector<8x16xf32> -> vector<8x16xf32>
    %36 = vector.broadcast %32 : vector<1x16xf32> to vector<8x16xf32>
    %37 = arith.addf %35, %36 : vector<8x16xf32>
    %cst_34 = arith.constant dense<0xFF800000> : vector<8xf32>
    %38 = vector.multi_reduction <maximumf>, %37, %cst_34 [1] : vector<8x16xf32> to vector<8xf32>
    %39 = vector.shape_cast %38 : vector<8xf32> to vector<8x1xf32>
    %40 = vector.broadcast %39 : vector<8x1xf32> to vector<8x16xf32>
    %41 = arith.subf %37, %40 : vector<8x16xf32>
    %42 = math.exp %41 : vector<8x16xf32>
    %cst_35 = arith.constant dense<0.000000e+00> : vector<8xf32>
    %43 = vector.multi_reduction <add>, %42, %cst_35 [1] : vector<8x16xf32> to vector<8xf32>
    %44 = vector.shape_cast %43 : vector<8xf32> to vector<8x1xf32>
    %45 = tpu.reciprocal %44 {approx = true} : vector<8x1xf32> -> vector<8x1xf32>
    %46 = vector.broadcast %45 : vector<8x1xf32> to vector<8x16xf32>
    %47 = arith.mulf %42, %46 : vector<8x16xf32>
    %c0_36 = arith.constant 0 : index
    %c0_37 = arith.constant 0 : index
    %c0_38 = arith.constant 0 : index
    %c0_39 = arith.constant 0 : index
    %48 = vector.load %arg10[%c0_36, %c0_37, %c0_38, %c0_39] : memref<1x1x8x16xf32, #tpu.memory_space<vmem>>, vector<1x1x8x16xf32>
    %49 = vector.shape_cast %48 : vector<1x1x8x16xf32> to vector<8x16xf32>
    %50 = vector.shape_cast %47 : vector<8x16xf32> to vector<1x1x8x16xf32>
    tpu.vector_store %arg10[%c0_36, %c0_37, %c0_38, %c0_39], %50 {strides = array<i32>} : memref<1x1x8x16xf32, #tpu.memory_space<vmem>>, vector<1x1x8x16xf32>,
    %51 = arith.truncf %47 : vector<8x16xf32> to vector<8x16xbf16>
    %52 = arith.truncf %26 : vector<16x8xf32> to vector<16x8xbf16>
    %cst_40 = arith.constant dense<0.000000e+00> : vector<8x8xf32>
    %53 = tpu.matmul %51, %52, %cst_40 {dimension_numbers = #tpu.dot_dimension_numbers<[1], [0], [0], [1], [0, 0, 1, 1], [], []>} : vector<8x16xbf16>, vector<16x8xbf16>, vector<8x8xf32> -> vector<8x8xf32>
    %54 = arith.truncf %53 : vector<8x8xf32> to vector<8x8xbf16>
    %c0_41 = arith.constant 0 : index
    %c0_42 = arith.constant 0 : index
    %c0_43 = arith.constant 0 : index
    %c0_44 = arith.constant 0 : index
    %55 = vector.load %arg9[%c0_41, %c0_42, %c0_43, %c0_44] : memref<1x1x8x8xbf16, #tpu.memory_space<vmem>>, vector<1x1x8x8xbf16>
    %56 = vector.shape_cast %55 : vector<1x1x8x8xbf16> to vector<8x8xbf16>
    %57 = vector.shape_cast %54 : vector<8x8xbf16> to vector<1x1x8x8xbf16>
    tpu.vector_store %arg9[%c0_41, %c0_42, %c0_43, %c0_44], %57 {strides = array<i32>} : memref<1x1x8x8xbf16, #tpu.memory_space<vmem>>, vector<1x1x8x8xbf16>,
    return
  }
  func.func @transform_0(%arg0: i32, %arg1: i32) -> (i32, i32, i32) {
    %c0_i32 = arith.constant 0 : i32
    %c0_i32_0 = arith.constant 0 : i32
    %c0_i32_1 = arith.constant 0 : i32
    return %arg0, %c0_i32, %c0_i32_0 : i32, i32, i32
  }
  func.func @transform_1(%arg0: i32, %arg1: i32) -> (i32, i32, i32) {
    %c0_i32 = arith.constant 0 : i32
    %c0_i32_0 = arith.constant 0 : i32
    %c0_i32_1 = arith.constant 0 : i32
    return %arg0, %c0_i32, %c0_i32_0 : i32, i32, i32
  }
  func.func @transform_2(%arg0: i32, %arg1: i32) -> (i32, i32, i32) {
    %c0_i32 = arith.constant 0 : i32
    %c0_i32_0 = arith.constant 0 : i32
    %c0_i32_1 = arith.constant 0 : i32
    return %arg1, %c0_i32, %c0_i32_0 : i32, i32, i32
  }
  func.func @transform_3(%arg0: i32, %arg1: i32) -> (i32, i32, i32) {
    %c0_i32 = arith.constant 0 : i32
    %c0_i32_0 = arith.constant 0 : i32
    %c0_i32_1 = arith.constant 0 : i32
    return %arg1, %c0_i32, %c0_i32_0 : i32, i32, i32
  }
  func.func @transform_4(%arg0: i32, %arg1: i32) -> (i32, i32, i32, i32) {
    %c0_i32 = arith.constant 0 : i32
    %c0_i32_0 = arith.constant 0 : i32
    %c0_i32_1 = arith.constant 0 : i32
    %c0_i32_2 = arith.constant 0 : i32
    return %arg1, %c0_i32, %c0_i32_0, %c0_i32_1 : i32, i32, i32, i32
  }
  func.func @transform_5(%arg0: i32, %arg1: i32) -> (i32, i32, i32, i32) {
    %c0_i32 = arith.constant 0 : i32
    %c0_i32_0 = arith.constant 0 : i32
    %c0_i32_1 = arith.constant 0 : i32
    %c0_i32_2 = arith.constant 0 : i32
    return %arg1, %c0_i32, %c0_i32_0, %c0_i32_1 : i32, i32, i32, i32
  }
  func.func @transform_6(%arg0: i32, %arg1: i32) -> (i32, i32, i32) {
    %c0_i32 = arith.constant 0 : i32
    %c0_i32_0 = arith.constant 0 : i32
    %c0_i32_1 = arith.constant 0 : i32
    return %arg0, %c0_i32, %c0_i32_0 : i32, i32, i32
  }
  func.func @transform_7(%arg0: i32, %arg1: i32) -> (i32, i32, i32, i32) {
    %c0_i32 = arith.constant 0 : i32
    %c0_i32_0 = arith.constant 0 : i32
    %c0_i32_1 = arith.constant 0 : i32
    return %arg0, %arg1, %c0_i32, %c0_i32_0 : i32, i32, i32, i32
  }
  func.func @transform_8(%arg0: i32, %arg1: i32) -> (i32, i32, i32, i32) {
    %c0_i32 = arith.constant 0 : i32
    %c0_i32_0 = arith.constant 0 : i32
    %c0_i32_1 = arith.constant 0 : i32
    return %arg0, %arg1, %c0_i32, %c0_i32_0 : i32, i32, i32, i32
  }
}

module attributes {stable_mosaic.version = 11 : i64} {
  func.func @kernel(%arg0: i32, %arg1: i32, %arg2: memref<16x32xf32, #tpu.memory_space<vmem>>, %arg3: memref<32x64xbf16, #tpu.memory_space<vmem>>, %arg4: memref<1x64xf32, #tpu.memory_space<vmem>>, %arg5: memref<64x32xbf16, #tpu.memory_space<vmem>>, %arg6: memref<1x32xf32, #tpu.memory_space<vmem>>, %arg7: memref<1x32xf32, #tpu.memory_space<vmem>>, %arg8: memref<1x32xf32, #tpu.memory_space<vmem>>, %arg9: memref<16x32xf32, #tpu.memory_space<vmem>>, %arg10: memref<16x32xf32, #tpu.memory_space<vmem>>) attributes {dimension_semantics = [#tpu.dimension_semantics<parallel>, #tpu.dimension_semantics<arbitrary>], iteration_bounds = array<i64: 1, 1>, scalar_prefetch = 0 : i64, scratch_operands = 1 : i64, tpu.core_type = #tpu.core_type<tc>, window_params = [{transform_indices = @transform_0, window_bounds = array<i64: 16, 32>}, {transform_indices = @transform_1, window_bounds = array<i64: 32, 64>}, {transform_indices = @transform_2, window_bounds = array<i64: 1, 64>}, {transform_indices = @transform_3, window_bounds = array<i64: 64, 32>}, {pipeline_mode = #tpu.pipeline_mode<synchronous>, transform_indices = @transform_4, window_bounds = array<i64: 1, 32>}, {pipeline_mode = #tpu.pipeline_mode<synchronous>, transform_indices = @transform_5, window_bounds = array<i64: 1, 32>}, {pipeline_mode = #tpu.pipeline_mode<synchronous>, transform_indices = @transform_6, window_bounds = array<i64: 1, 32>}, {transform_indices = @transform_7, window_bounds = array<i64: 16, 32>}]} {
    %c0_i32 = arith.constant 0 : i32
    %0 = arith.cmpi eq, %arg1, %c0_i32 : i32
    %1 = arith.extui %0 : i1 to i32
    %c0_i32_0 = arith.constant 0 : i32
    %2 = arith.cmpi ne, %1, %c0_i32_0 : i32
    scf.if %2 {
      %c0_16 = arith.constant 0 : index
      %c0_17 = arith.constant 0 : index
      %21 = vector.load %arg2[%c0_16, %c0_17] : memref<16x32xf32, #tpu.memory_space<vmem>>, vector<16x32xf32>
      %c0_18 = arith.constant 0 : index
      %c0_19 = arith.constant 0 : index
      %22 = vector.load %arg6[%c0_18, %c0_19] : memref<1x32xf32, #tpu.memory_space<vmem>>, vector<1x32xf32>
      %23 = vector.broadcast %22 : vector<1x32xf32> to vector<16x32xf32>
      %24 = arith.addf %21, %23 : vector<16x32xf32>
      %c0_20 = arith.constant 0 : index
      %c0_21 = arith.constant 0 : index
      %25 = vector.load %arg10[%c0_20, %c0_21] : memref<16x32xf32, #tpu.memory_space<vmem>>, vector<16x32xf32>
      tpu.vector_store %arg10[%c0_20, %c0_21], %24 {strides = array<i32>} : memref<16x32xf32, #tpu.memory_space<vmem>>, vector<16x32xf32>,
    } else {
    }
    %c0 = arith.constant 0 : index
    %c0_1 = arith.constant 0 : index
    %3 = vector.load %arg2[%c0, %c0_1] : memref<16x32xf32, #tpu.memory_space<vmem>>, vector<16x32xf32>
    %4 = arith.truncf %3 : vector<16x32xf32> to vector<16x32xbf16>
    %c0_2 = arith.constant 0 : index
    %c0_3 = arith.constant 0 : index
    %5 = vector.load %arg3[%c0_2, %c0_3] : memref<32x64xbf16, #tpu.memory_space<vmem>>, vector<32x64xbf16>
    %cst = arith.constant dense<0.000000e+00> : vector<16x64xf32>
    %6 = tpu.matmul %4, %5, %cst {dimension_numbers = #tpu.dot_dimension_numbers<[1], [0], [0], [1], [0, 0, 1, 1], [], []>} : vector<16x32xbf16>, vector<32x64xbf16>, vector<16x64xf32> -> vector<16x64xf32>
    %c0_4 = arith.constant 0 : index
    %c0_5 = arith.constant 0 : index
    %7 = vector.load %arg4[%c0_4, %c0_5] : memref<1x64xf32, #tpu.memory_space<vmem>>, vector<1x64xf32>
    %8 = vector.broadcast %7 : vector<1x64xf32> to vector<16x64xf32>
    %9 = arith.addf %6, %8 : vector<16x64xf32>
    %cst_6 = arith.constant 0.000000e+00 : f32
    %10 = vector.broadcast %cst_6 : f32 to vector<16x64xf32>
    %11 = arith.maximumf %9, %10 : vector<16x64xf32>
    %c0_7 = arith.constant 0 : index
    %c0_8 = arith.constant 0 : index
    %12 = vector.load %arg10[%c0_7, %c0_8] : memref<16x32xf32, #tpu.memory_space<vmem>>, vector<16x32xf32>
    %13 = arith.truncf %11 : vector<16x64xf32> to vector<16x64xbf16>
    %c0_9 = arith.constant 0 : index
    %c0_10 = arith.constant 0 : index
    %14 = vector.load %arg5[%c0_9, %c0_10] : memref<64x32xbf16, #tpu.memory_space<vmem>>, vector<64x32xbf16>
    %cst_11 = arith.constant dense<0.000000e+00> : vector<16x32xf32>
    %15 = tpu.matmul %13, %14, %cst_11 {dimension_numbers = #tpu.dot_dimension_numbers<[1], [0], [0], [1], [0, 0, 1, 1], [], []>} : vector<16x64xbf16>, vector<64x32xbf16>, vector<16x32xf32> -> vector<16x32xf32>
    %16 = arith.addf %12, %15 : vector<16x32xf32>
    %c0_12 = arith.constant 0 : index
    %c0_13 = arith.constant 0 : index
    %17 = vector.load %arg10[%c0_12, %c0_13] : memref<16x32xf32, #tpu.memory_space<vmem>>, vector<16x32xf32>
    tpu.vector_store %arg10[%c0_12, %c0_13], %16 {strides = array<i32>} : memref<16x32xf32, #tpu.memory_space<vmem>>, vector<16x32xf32>,
    %c0_i32_14 = arith.constant 0 : i32
    %18 = arith.cmpi eq, %arg1, %c0_i32_14 : i32
    %19 = arith.extui %18 : i1 to i32
    %c0_i32_15 = arith.constant 0 : i32
    %20 = arith.cmpi ne, %19, %c0_i32_15 : i32
    scf.if %20 {
      %c0_16 = arith.constant 0 : index
      %c0_17 = arith.constant 0 : index
      %21 = vector.load %arg10[%c0_16, %c0_17] : memref<16x32xf32, #tpu.memory_space<vmem>>, vector<16x32xf32>
      %cst_18 = arith.constant dense<0.000000e+00> : vector<16xf32>
      %22 = vector.multi_reduction <add>, %21, %cst_18 [1] : vector<16x32xf32> to vector<16xf32>
      %23 = vector.shape_cast %22 : vector<16xf32> to vector<16x1xf32>
      %cst_19 = arith.constant 3.200000e+01 : f32
      %24 = vector.broadcast %cst_19 : f32 to vector<16x1xf32>
      %25 = arith.divf %23, %24 : vector<16x1xf32>
      %26 = vector.broadcast %25 : vector<16x1xf32> to vector<16x32xf32>
      %27 = arith.subf %21, %26 : vector<16x32xf32>
      %28 = arith.mulf %27, %27 : vector<16x32xf32>
      %cst_20 = arith.constant dense<0.000000e+00> : vector<16xf32>
      %29 = vector.multi_reduction <add>, %28, %cst_20 [1] : vector<16x32xf32> to vector<16xf32>
      %30 = vector.shape_cast %29 : vector<16xf32> to vector<16x1xf32>
      %cst_21 = arith.constant 3.200000e+01 : f32
      %31 = vector.broadcast %cst_21 : f32 to vector<16x1xf32>
      %32 = arith.divf %30, %31 : vector<16x1xf32>
      %33 = vector.broadcast %25 : vector<16x1xf32> to vector<16x32xf32>
      %34 = arith.subf %21, %33 : vector<16x32xf32>
      %cst_22 = arith.constant 9.99999974E-6 : f32
      %35 = vector.broadcast %cst_22 : f32 to vector<16x1xf32>
      %36 = arith.addf %32, %35 : vector<16x1xf32>
      %37 = math.rsqrt %36 : vector<16x1xf32>
      %38 = vector.broadcast %37 : vector<16x1xf32> to vector<16x32xf32>
      %39 = arith.mulf %34, %38 : vector<16x32xf32>
      %c0_23 = arith.constant 0 : index
      %c0_24 = arith.constant 0 : index
      %40 = vector.load %arg7[%c0_23, %c0_24] : memref<1x32xf32, #tpu.memory_space<vmem>>, vector<1x32xf32>
      %41 = vector.broadcast %40 : vector<1x32xf32> to vector<16x32xf32>
      %42 = arith.mulf %39, %41 : vector<16x32xf32>
      %c0_25 = arith.constant 0 : index
      %c0_26 = arith.constant 0 : index
      %43 = vector.load %arg8[%c0_25, %c0_26] : memref<1x32xf32, #tpu.memory_space<vmem>>, vector<1x32xf32>
      %44 = vector.broadcast %43 : vector<1x32xf32> to vector<16x32xf32>
      %45 = arith.addf %42, %44 : vector<16x32xf32>
      %c0_27 = arith.constant 0 : index
      %c0_28 = arith.constant 0 : index
      %46 = vector.load %arg9[%c0_27, %c0_28] : memref<16x32xf32, #tpu.memory_space<vmem>>, vector<16x32xf32>
      tpu.vector_store %arg9[%c0_27, %c0_28], %45 {strides = array<i32>} : memref<16x32xf32, #tpu.memory_space<vmem>>, vector<16x32xf32>,
    } else {
    }
    return
  }
  func.func @transform_0(%arg0: i32, %arg1: i32) -> (i32, i32) {
    %c0_i32 = arith.constant 0 : i32
    %c0_i32_0 = arith.constant 0 : i32
    return %arg0, %c0_i32 : i32, i32
  }
  func.func @transform_1(%arg0: i32, %arg1: i32) -> (i32, i32) {
    %c0_i32 = arith.constant 0 : i32
    %c0_i32_0 = arith.constant 0 : i32
    return %c0_i32, %arg1 : i32, i32
  }
  func.func @transform_2(%arg0: i32, %arg1: i32) -> (i32, i32) {
    %c0_i32 = arith.constant 0 : i32
    %c0_i32_0 = arith.constant 0 : i32
    return %c0_i32, %arg1 : i32, i32
  }
  func.func @transform_3(%arg0: i32, %arg1: i32) -> (i32, i32) {
    %c0_i32 = arith.constant 0 : i32
    %c0_i32_0 = arith.constant 0 : i32
    return %arg1, %c0_i32 : i32, i32
  }
  func.func @transform_4(%arg0: i32, %arg1: i32) -> (i32, i32) {
    %c0_i32 = arith.constant 0 : i32
    %c0_i32_0 = arith.constant 0 : i32
    %c0_i32_1 = arith.constant 0 : i32
    return %c0_i32, %c0_i32_0 : i32, i32
  }
  func.func @transform_5(%arg0: i32, %arg1: i32) -> (i32, i32) {
    %c0_i32 = arith.constant 0 : i32
    %c0_i32_0 = arith.constant 0 : i32
    %c0_i32_1 = arith.constant 0 : i32
    return %c0_i32, %c0_i32_0 : i32, i32
  }
  func.func @transform_6(%arg0: i32, %arg1: i32) -> (i32, i32) {
    %c0_i32 = arith.constant 0 : i32
    %c0_i32_0 = arith.constant 0 : i32
    %c0_i32_1 = arith.constant 0 : i32
    return %c0_i32, %c0_i32_0 : i32, i32
  }
  func.func @transform_7(%arg0: i32, %arg1: i32) -> (i32, i32) {
    %c0_i32 = arith.constant 0 : i32
    %c0_i32_0 = arith.constant 0 : i32
    return %arg0, %c0_i32 : i32, i32
  }
}

</mosaic_0001>

<bundles_post_ra>
// kernel: decoder_layer.6
= control target key start
LH: loop header
LB: loop body
LE: loop exit
PB: predicated region body
PF: predicated region fallthrough
CT: control target
= control target key end

     0   :  { %s793_s21 = smov 0   ;;  %s795_s22 = smov 0   ;;  %s869_s0 = inlined_call_operand.vmem [shape: bf16[2,4,8,8], index: 0, kind: input, shape index: {}]   ;;  %s870_s1 = inlined_call_operand.vmem [shape: f32[2,8,32], index: 1, kind: input, shape index: {}]   ;;  %s871_s2 = inlined_call_operand.vmem [shape: bf16[4,8,32], index: 2, kind: input, shape index: {}]   ;;  %s872_s3 = inlined_call_operand.vmem [shape: f32[1,32], index: 3, kind: input, shape index: {}]   ;;  %s873_s4 = inlined_call_operand.vmem [shape: f32[1,32], index: 4, kind: input, shape index: {}]   ;;  %s874_s5 = inlined_call_operand.vmem [shape: f32[1,32], index: 5, kind: input, shape index: {}]   ;;  %s875_s6 = inlined_call_operand.vmem [shape: f32[2,8,32], index: 6, kind: output, shape index: {}]  }
   0x1   :  { %s797_s23 = smov 0  }
   0x2 LB: > { %s28_s24 = sadd.s32 1, %s750_s22  ;;  %p651_p0 = scmp.ge.s32.totalorder %s754_s23, 1  ;;  %s754_s23 = sphi %s797_s23, %s16_s23   ;;  %s750_s22 = sphi %s795_s22, %s877_s22   ;;  %s746_s21 = sphi %s793_s21, %s876_s21  }
   0x3   : > { %p30_p1 = scmp.ge.s32.totalorder %s28_s24, 2  ;;  %p245_p2 = scmp.lt.s32.totalorder %s754_s23, 3 }
   0x5   : > { %s879_s24 = smov (%p30_p1, %s28_s24), 0  ;;  %p246_p3 = pnand %p651_p0, %p245_p2 }
   0x6   : > { %p287_p4 = scmp.lt.s32.totalorder (!%p246_p3), %s746_s21, 1 }
   0x7   : > { %249 = sbr.rel (%p246_p3) target bundleno = 531 (0x213), region = 44 }
   0xc   : > { %v320_v0 = vld [vmem:[%s871_s2] sm:$0xf]  ;;  %vm325_vm0 = vcmask 1043456   ;;  %v659_v1 = vld [vmem:[%s871_s2 + $0x4] sm:$0xf]  ;;  %v756_v2 = vmov 0.0  }
   0xd   : > { %680 = vmatprep.subr.bf16.mxu0 %v756_v2  ;;  %v327_v3 = vsel %vm325_vm0, %v320_v0, 0  ;;  %686 = vmatprep.subr.bf16.mxu1 %v756_v2  ;;  %v378_v4 = vsel %vm325_vm0, %v659_v1, 0  ;;  %vm757_vm1 = vmmov 0   ;;  %s881_s21 = smov (!%p287_p4, %s746_s21), 1  ;;  %v662_v5 = vld [vmem:[%s871_s2 + $0x8] sm:$0xf] }
   0xe   : > { %681 = vmatpush3.bf16.msra.mxu0 %v327_v3  ;;  %687 = vmatpush3.bf16.msra.mxu1 %v378_v4  ;;  %v665_v6 = vld [vmem:[%s871_s2 + $0xc] sm:$0xf]  ;;  %s671_s9 = sshll.u32 %s881_s21, 4  ;;  %vm321_vm2 = vcmask 64512   ;;  %v429_v7 = vsel %vm325_vm0, %v662_v5, 0  ;;  %s654_s13 = sshll.u32 %s881_s21, 3 }
   0xf   : > { %682 = vmatprep.mubr.msk.bf16.mxu0 %vm757_vm1, %v756_v2  ;;  %688 = vmatprep.mubr.msk.bf16.mxu1 %vm757_vm1, %v756_v2  ;;  %s294_s12 = scalar_lea.vmem %s869_s0, %s671_s9  ;;  %v480_v8 = vsel %vm325_vm0, %v665_v6, 0  ;;  %s301_s16 = scalar_lea.vmem %s870_s1, %s654_s13  ;;  %v656_v14 = vld [vmem:[%s872_s3] ss:$0 sm:$0xff]  ;;  %vm523_vm3 = vcmask 261120  }
  0x10   : > { %692 = vmatprep.subr.bf16.mxu0 %v756_v2  ;;  %698 = vmatprep.subr.bf16.mxu1 %v756_v2  ;;  %v319_v9 = vld [vmem:[%s294_s12] sm:$0xf]  ;;  %v658_v10 = vld [vmem:[%s294_s12 + $0x4] sm:$0xf]  ;;  %v661_v11 = vld [vmem:[%s294_s12 + $0x8] sm:$0xf]  ;;  %s308_s29 = scalar_lea.vmem %s875_s6, %s654_s13 }
  0x11   : > { %683 = vmatmul.mubr.msk.bf16.vlgmr.msra.gmra.mxu0 %vm321_vm2, %v319_v9  ;;  %689 = vmatmul.mubr.msk.bf16.vlgmr.msra.gmra.mxu1 %vm321_vm2, %v658_v10  ;;  %v664_v12 = vld [vmem:[%s294_s12 + $0xc] sm:$0xf]  ;;  %v310_v13 = vld [vmem:[%s301_s16] sm:$0xff] }
  0x12   : > { %693 = vmatpush3.bf16.msra.mxu0 %v429_v7  ;;  %699 = vmatpush3.bf16.msra.mxu1 %v480_v8  ;;  %v318_v15 = vadd.f32 %v656_v14, %v310_v13  ;;  %v667_v46 = vld [vmem:[%s873_s4] ss:$0 sm:$0xff] }
  0x13   : > { %694 = vmatprep.mubr.msk.bf16.mxu0 %vm757_vm1, %v756_v2  ;;  %700 = vmatprep.mubr.msk.bf16.mxu1 %vm757_vm1, %v756_v2  ;;  %v668_v48 = vld [vmem:[%s874_s5] ss:$0 sm:$0xff] }
  0x19   : > { %695 = vmatmul.mubr.msk.bf16.vlgmr.msra.gmra.mxu0 %vm321_vm2, %v661_v11  ;;  %701 = vmatmul.mubr.msk.bf16.vlgmr.msra.gmra.mxu1 %vm321_vm2, %v664_v12 }
  0xd1   : > { %v363_v16 = vpop.f32.mrf.mxu0  ;;  %v414_v17 = vpop.f32.mrf.mxu1 }
  0xd2   : > { %v369_v20 = vadd.f32 %v363_v16, %v318_v15 }
  0xd3   : > { %v684_v18 = vpop.f32.mrf.mxu0  ;;  %v690_v19 = vpop.f32.mrf.mxu1 }
  0xd4   : > { %v420_v25 = vadd.f32 %v414_v17, %v369_v20 }
  0xd5   : > { %v366_v21 = vpop.f32.mrf.mxu0  ;;  %v417_v22 = vpop.f32.mrf.mxu1 }
  0xd7   : > { %v685_v23 = vpop.f32.mrf.mxu0  ;;  %v691_v24 = vpop.f32.mrf.mxu1 }
  0xd9   : > { %v465_v26 = vpop.f32.mrf.mxu0  ;;  %v516_v27 = vpop.f32.mrf.mxu1 }
  0xda   : > { %v471_v28 = vadd.f32 %v465_v26, %v420_v25 }
  0xdb   : > { %v696_v29 = vpop.f32.mrf.mxu0  ;;  %v702_v30 = vpop.f32.mrf.mxu1 }
  0xdc   : > { %v522_v31 = vadd.f32 %v516_v27, %v471_v28 }
  0xdd   : > { %v468_v32 = vpop.f32.mrf.mxu0  ;;  %v519_v33 = vpop.f32.mrf.mxu1 }
  0xde   : > { %v524_v34 = vsel %vm523_vm3, %v522_v31, 0.0 }
  0xdf   : > { %v703_v35 = vpop.f32.mrf.mxu1  ;;  %525 = vadd.xlane.f32.xlu0 %v524_v34  ;;  %v697_v36 = vpop.f32.mrf.mxu0 }
 0x168   : > { %v526_v37 = vpop.xlane.xlu0 %525 }
 0x169   : > { %v528_v38 = vmul.f32 0.03125, %v526_v37 }
 0x16b   : > { %v529_v39 = vsub.f32 %v522_v31, %v528_v38 }
 0x16d   : > { %v530_v40 = vmul.f32 %v529_v39, %v529_v39 }
 0x16f   : > { %v531_v41 = vsel %vm523_vm3, %v530_v40, 0.0 }
 0x170   : > { %532 = vadd.xlane.f32.xlu0 %v531_v41 }
 0x1f9   : > { %v533_v42 = vpop.xlane.xlu0 %532 }
 0x1fa   : > { %v534_v43 = vmul.f32 0.03125, %v533_v42 }
 0x1fc   : > { %v535_v44 = vadd.f32 1e-05, %v534_v43 }
 0x1fe   : > { %730 = vrsqrt.f32 %v535_v44 }
 0x20b   : > { %v731_v45 = vpop.eup %730 }
 0x20c   : > { %v537_v47 = vmul.f32 %v731_v45, %v529_v39 }
 0x20e   : > { %v545_v49 = vmul.f32 %v667_v46, %v537_v47 }
 0x210   : > { %v553_v50 = vadd.f32 %v668_v48, %v545_v49 }
 0x212   : > { %554 = vst.msk [vmem:[%s308_s29] sm:$0xff] %vm523_vm3, %v553_v50 }
 0x213 PF: > { %s16_s23 = sadd.s32 1, %s754_s23   ;;  %s876_s21 = smov %s750_s22 }
 0x214   : > { %p13_p5 = scmp.ge.s32.totalorder %s16_s23, 4   ;;  %s877_s22 = smov %s879_s24 }
 0x216   :  { %15 = sbr.rel (!%p13_p5) target bundleno = 2 (0x2), region = 83 }

// kernel: decoder_layer.5
= control target key start
LH: loop header
LB: loop body
LE: loop exit
PB: predicated region body
PF: predicated region fallthrough
CT: control target
= control target key end

     0   :  { %s1270_s0 = inlined_call_operand.vmem [shape: f32[2,8,32], index: 0, kind: input, shape index: {}]   ;;  %s1271_s1 = inlined_call_operand.vmem [shape: bf16[4,3,32,8], index: 1, kind: input, shape index: {}]   ;;  %s1272_s2 = inlined_call_operand.vmem [shape: f32[4,3,1,8], index: 2, kind: input, shape index: {}]   ;;  %s1273_s3 = inlined_call_operand.vmem [shape: f32[2,1,8], index: 3, kind: input, shape index: {}]   ;;  %s1274_s4 = inlined_call_operand.vmem [shape: bf16[2,4,8,8], index: 4, kind: output, shape index: {0}]   ;;  %s1275_s5 = inlined_call_operand.hbm [shape: f32[2,4,8,8], index: 5, kind: output, shape index: {1}]  }
   0x1   :  { %1276 = sst [smem:[#allocation5_spill]] %s1270_s0 }
   0x2   :  { %1277 = sst [smem:[#allocation6_spill]] %s1271_s1 }
   0x3   :  { %1278 = sst [smem:[#allocation7_spill]] %s1272_s2 }
   0x4   :  { %1279 = sst [smem:[#allocation8_spill]] %s1273_s3 }
   0x5   :  { %11 = vsyncpa [#allocation3], 0 }
   0x6   :  { %13 = vsyncpa [#allocation3 + $0x1], 0  ;;  %s1097_s18 = smov 0   ;;  %s1099_s19 = smov 0  }
   0x7   :  { %s1101_s20 = smov 0   ;;  %s1103_s21 = smov 0  }
   0x8   :  { %s1105_s22 = smov 0   ;;  %s1107_s23 = smov 0  }
   0x9   :  { %s1109_s24 = smov 0   ;;  %s1111_s25 = smov 0  }
   0xa LB: > { %s796_s26 = sadd.s32 4294967295, %s1062_s25   ;;  %s797_s27 = sadd.s32 4294967294, %s1062_s25   ;;  %s1062_s25 = sphi %s1111_s25, %s19_s25   ;;  %s1058_s24 = sphi %s1109_s24, %s1292_s24   ;;  %s1054_s23 = sphi %s1107_s23, %s1291_s23   ;;  %s1050_s22 = sphi %s1105_s22, %s1290_s22   ;;  %s1046_s21 = sphi %s1103_s21, %s1289_s21   ;;  %s1042_s20 = sphi %s1101_s20, %s1288_s20   ;;  %s1038_s19 = sphi %s1099_s19, %s1287_s19   ;;  %s1034_s18 = sphi %s1097_s18, %s1286_s18  }
   0xb   : > { %s28_s28 = sadd.s32 1, %s1054_s23  ;;  %s31_s29 = sadd.s32 1, %s1058_s24 }
   0xc   : > { %p29_p0 = scmp.ge.s32.totalorder %s28_s28, 4  ;;  %p182_p1 = scmp.ne.s32.totalorder %s1042_s20, %s1038_s19 }
   0xd   : > { %p183_p2 = scmp.eq.s32.totalorder %s796_s26, 7  ;;  %p188_p5 = scmp.ne.s32.totalorder %s1038_s19, %s1034_s18 }
   0xe   : > { %s1294_s28 = smov (%p29_p0, %s28_s28), 0  ;;  %s1296_s29 = smov (!%p29_p0, %s31_s29), %s1058_s24 }
   0xf   : > { %s168_s30 = ssub.s32 %s1054_s23, %s1294_s28  ;;  %p1148_p3 = por %p183_p2, %p182_p1 }
  0x10   : > { %p33_p4 = scmp.ge.s32.totalorder %s1296_s29, 2  ;;  %p189_p6 = scmp.eq.s32.totalorder %s797_s27, 7 }
  0x11   : > { %p800_p7 = scmp.ge.s32.totalorder %s1062_s25, 1  ;;  %p235_p9 = scmp.lt.s32.totalorder %s1062_s25, 9 }
  0x12   : > { %s1298_s29 = smov (%p33_p4, %s1296_s29), 0  ;;  %p1157_p8 = por %p189_p6, %p188_p5 }
  0x13   : > { %s167_s8 = ssub.s32 %s1058_s24, %s1298_s29  ;;  %s172_s9 = sadd.s32 1, %s1042_s20 }
  0x14   : > { %s169_s10 = sor.u32 %s168_s30, %s167_s8  ;;  %p236_p10 = pnand %p800_p7, %p235_p9 }
  0x15   : > { %p170_p11 = scmp.eq.s32.totalorder %s169_s10, 0  ;;  %p286_p12 = scmp.lt.s32.totalorder (!%p236_p10), %s1046_s21, 3 }
  0x16   : > { %239 = sbr.rel (%p236_p10) target bundleno = 953 (0x3b9), region = 36  ;;  %p282_p13 = scmp.lt.s32.totalorder (!%p236_p10), %s1050_s22, 1 }
  0x17   : > { %s1166_s11 = scalar_select %p170_p11, %s1042_s20, %s172_s9  }
  0x18   : > { %s1282_s1 = sld [smem:[#allocation6_spill]] (!%p236_p10) }
  0x19   : > { %s1283_s0 = sld [smem:[#allocation5_spill]] (!%p236_p10) }
  0x1a   : > { %s1284_s2 = sld [smem:[#allocation7_spill]] (!%p236_p10) }
  0x1b   : > { %v1064_v0 = vmov 0.0   ;;  %s1171_s12 = scalar_select %p286_p12, %s1046_s21, 3  ;;  %vm1065_vm0 = vmmov 0   ;;  %vm332_vm1 = vcmask 261120   ;;  %vm517_vm2 = vcmask 64512  }
  0x1c   : > { %857 = vmatprep.subr.bf16.mxu1 %v1064_v0  ;;  %849 = vmatprep.subr.bf16.mxu0 %v1064_v0  ;;  %s1176_s13 = scalar_select %p282_p13, %s1050_s22, 1  ;;  %v512_v24 = vlaneseq  ;;  %vm581_vm3 = vcmask 1043456  }
  0x1d   : > { %861 = vmatprep.mubr.msk.bf16.mxu1 %vm1065_vm0, %v1064_v0  ;;  %853 = vmatprep.mubr.msk.bf16.mxu0 %vm1065_vm0, %v1064_v0  ;;  %s885_s14 = smul.u32 48, %s1171_s12  ;;  %s1285_s3 = sld [smem:[#allocation8_spill]] }
  0x1e   : > { %s802_s15 = sshll.u32 %s1176_s13, 3  ;;  %s886_s9 = smul.u32 3, %s1171_s12  ;;  %v513_v27 = vshrl.u32 %v512_v24, 7 }
  0x1f   : > { %s1183_s26 = scalar_lea.vmem %s1282_s1, %s885_s14  ;;  %s285_s8 = scalar_lea.vmem %s1283_s0, %s802_s15 }
  0x20   : > { %v960_v1 = vld [vmem:[%s1183_s26 + $0x18] sm:$0xff]   ;;  %v961_v2 = vld [vmem:[%s1183_s26 + $0x8] sm:$0xff]   ;;  %v962_v3 = vld [vmem:[%s1183_s26 + $0x10] sm:$0xff]   ;;  %s1200_s15 = scalar_lea.vmem %s1284_s2, %s886_s9  ;;  %v514_v29 = vsub.s32 0, %v513_v27  ;;  %s832_s9 = sshll.u32 %s1050_s22, 2 }
  0x21   : > { %858 = vmatpush3.bf16.msra.mxu1 %v960_v1  ;;  %850 = vmatpush3.bf16.msra.mxu0 %v961_v2  ;;  %v963_v4 = vld [vmem:[%s1183_s26] sm:$0xff]   ;;  %v964_v22 = vld [vmem:[%s1183_s26 + $0x28] sm:$0xff]   ;;  %s651_s10 = sadd.s32 %s1046_s21, %s832_s9 }
  0x22   : > { %859 = vmatprep.subr.bf16.mxu1 %v1064_v0  ;;  %851 = vmatprep.subr.bf16.mxu0 %v1064_v0  ;;  %v307_v5 = vld [vmem:[%s285_s8] sm:$0xff]  ;;  %s833_s14 = sshll.u32 %s651_s10, 7 }
  0x23   : > { %v308_v6 = vpack.c.bf16 %v307_v5, %v307_v5  ;;  %v815_v7 = vld [vmem:[%s1200_s15 + $0x1] ss:$0 sm:$0xff]  ;;  %v806_v12 = vld [vmem:[%s1200_s15] ss:$0 sm:$0xff]  ;;  %s297_s27 = scalar_lea.vmem %s1285_s3, %s1176_s13  ;;  %v824_v45 = vld [vmem:[%s1200_s15 + $0x2] ss:$0 sm:$0xff] }
  0x24   : > { %v965_v23 = vld [vmem:[%s1183_s26 + $0x20] sm:$0xff]   ;;  %s279_s26 = sand.u32 1, %s1038_s19  }
  0x25   : > { %860 = vmatpush3.bf16.msra.mxu1 %v962_v3  ;;  %852 = vmatpush3.bf16.msra.mxu0 %v963_v4  ;;  %v506_v25 = vld [vmem:[%s297_s27] sm:$0x1]  ;;  %s801_s30 = sshll.u32 %s279_s26, 3  ;;  %s653_s27 = scalar_lea.hbm %s1275_s5, %s833_s14 }
  0x26   : > { %873 = vmatprep.subr.bf16.mxu1 %v1064_v0  ;;  %865 = vmatprep.subr.bf16.mxu0 %v1064_v0  ;;  %v828_v26 = vadd.f32 -1.0, %v506_v25  ;;  %s281_s8 = scalar_lea.vmem [#allocation2], %s801_s30  ;;  %s637_s0 = scalar_lea.sflag [#allocation3], %s279_s26 }
  0x27   : > { %s655_s15 = sshll.u32 %s281_s8, 4  ;;  %s1066_s30 = smov [#allocation2]   ;;  %s656_s15 = int_to_ptr.vmem [resolvable:$true] %s655_s15 }
  0x28   : > { %862 = vmatmul.mubr.msk.bf16.vlgmr.msra.gmra.mxu1 %vm332_vm1, %v308_v6  ;;  %854 = vmatmul.mubr.msk.bf16.vlgmr.msra.gmra.mxu0 %vm332_vm1, %v308_v6  ;;  %v508_v28 = vmul.f32 1e+10, %v828_v26  ;;  %s970_s1 = scalar_lea.vmem %s656_s15, 128  ;;  %s974_s2 = sshll.u32 %s1066_s30, 4  ;;  %s975_s2 = int_to_ptr.vmem [resolvable:$false] %s974_s2 }
  0x29   : > { %875 = vmatprep.mubr.msk.bf16.mxu1 %vm1065_vm0, %v1064_v0  ;;  %869 = vmatprep.mubr.msk.bf16.mxu0 %vm1065_vm0, %v1064_v0  ;;  %p971_p0 = scmp.ne.s32.totalorder %s656_s15, %s970_s1  ;;  %s976_s3 = scalar_lea.vmem %s975_s2, 256 }
  0x2a   : > { %866 = vmatpush3.bf16.msra.mxu0 %v964_v22  ;;  %v515_v30 = vrot.slane %v508_v28, %v514_v29  ;;  %p977_p4 = scmp.lt.s32.totalorder %s656_s15, %s975_s2  ;;  %p978_p5 = scmp.lt.s32.totalorder %s976_s3, %s970_s1 }
  0x2b   : > { %867 = vmatprep.subr.bf16.mxu0 %v1064_v0  ;;  %p972_p1 = pnand %p971_p0, %p1148_p3 }
  0x2c   : > { %p979_p6 = por %p978_p5, %p977_p4 }
  0x2d   : > { %p973_p2 = pneg %p972_p1 }
  0x2e   : > { %868 = vmatpush3.bf16.msra.mxu0 %v965_v23 }
  0x2f   : > { %879 = vmatprep.subr.bf16.mxu0 %v1064_v0  ;;  %p980_p7 = pnand %p979_p6, %p973_p2 }
  0x31   : > { %870 = vmatmul.mubr.msk.bf16.vlgmr.msra.gmra.mxu0 %vm332_vm1, %v308_v6 }
  0x32   : > { %881 = vmatprep.mubr.msk.bf16.mxu0 %vm1065_vm0, %v1064_v0 }
  0xe8   : > { %v435_v8 = vpop.f32.mrf.mxu1  ;;  %v370_v10 = vpop.f32.mrf.mxu0 }
  0xe9   : > { %v436_v9 = vadd.f32 %v815_v7, %v435_v8  ;;  %v371_v17 = vadd.f32 %v806_v12, %v370_v10 }
  0xea   : > { %v863_v11 = vpop.f32.mrf.mxu1  ;;  %v855_v14 = vpop.f32.mrf.mxu0 }
  0xeb   : > { %v510_v13 = vpack.c.bf16 %v436_v9, %v436_v9  ;;  %v509_v21 = vpack.c.bf16 %v371_v17, %v371_v17 }
  0xec   : > { %v438_v15 = vpop.f32.mrf.mxu1  ;;  %v373_v18 = vpop.f32.mrf.mxu0 }
  0xed   : > { %v522_v16 = vsel %vm517_vm2, %v510_v13, 0 }
  0xee   : > { %v864_v19 = vpop.f32.mrf.mxu1  ;;  %874 = vmatpush3.bf16.xpose.msra.mxu1 %v522_v16  ;;  %v856_v20 = vpop.f32.mrf.mxu0 }
  0xf1   : > { %v500_v42 = vpop.f32.mrf.mxu0 }
  0xf2   : > { %v501_v47 = vadd.f32 %v824_v45, %v500_v42 }
  0xf3   : > { %v871_v43 = vpop.f32.mrf.mxu0 }
  0xf4   : > { %v577_v48 = vpack.c.bf16 %v501_v47, %v501_v47 }
  0xf5   : > { %876 = vmatmul.mubr.msk.bf16.vlgmr.msra.gmra.mxu1 %vm517_vm2, %v509_v21  ;;  %v503_v44 = vpop.f32.mrf.mxu0 }
  0xf6   : > { %v583_v49 = vsel %vm581_vm3, %v577_v48, 0 }
  0xf7   : > { %v872_v46 = vpop.f32.mrf.mxu0  ;;  %880 = vmatpush3.bf16.msra.mxu0 %v583_v49 }
 0x1b5   : > { %v558_v31 = vpop.f32.mrf.mxu1 }
 0x1b6   : > { %v559_v32 = vadd.f32 %v558_v31, %v515_v30 }
 0x1b7   : > { %v877_v33 = vpop.f32.mrf.mxu1 }
 0x1b8   : > { %v564_v34 = vsel %vm517_vm2, %v559_v32, -inf }
 0x1b9   : > { %565 = vmax.xlane.f32.xlu0 %v564_v34  ;;  %v561_v35 = vpop.f32.mrf.mxu1 }
 0x1bb   : > { %v878_v36 = vpop.f32.mrf.mxu1 }
 0x242   : > { %v566_v37 = vpop.xlane.xlu0 %565 }
 0x243   : > { %v567_v38 = vsub.f32 %v559_v32, %v566_v37 }
 0x245   : > { %v568_v39 = vmul.f32 1.442695, %v567_v38 }
 0x247   : > { %966 = vpow2.f32 %v568_v39 }
 0x254   : > { %v967_v40 = vpop.eup %966 }
 0x255   : > { %v570_v41 = vsel %vm517_vm2, %v967_v40, 0.0 }
 0x256   : > { %571 = vadd.xlane.f32.xlu0 %v570_v41 }
 0x2df   : > { %v572_v50 = vpop.xlane.xlu0 %571 }
 0x2e0   : > { %968 = vrcp.f32 %v572_v50 }
 0x2ed   : > { %v969_v51 = vpop.eup %968 }
 0x2ee   : > { %v574_v52 = vmul.f32 %v969_v51, %v967_v40 }
 0x2f0   : > { %v576_v53 = vpack.c.bf16 %v574_v52, %v574_v52  ;;  %575 = vst.msk [vmem:[%s281_s8] sm:$0xff] %vm517_vm2, %v574_v52 }
 0x2f2   : > { %882 = vmatmul.mubr.msk.bf16.vlgmr.msra.gmra.mxu0 %vm517_vm2, %v576_v53 }
 0x2f3   : > { %983 = shalt.err (!%p980_p7)
}
 0x2f4   : > { %s984_s21 = scalar_lea.hbm %s653_s27, 128  ;;  %s988_s8 = scalar_lea.hbm %s1275_s5, 1024 }
 0x2f5   : > { %p985_p9 = scmp.ne.s32.totalorder %s653_s27, %s984_s21  ;;  %p989_p12 = scmp.lt.s32.totalorder %s653_s27, %s1275_s5 }
 0x2f6   : > { %p990_p13 = scmp.lt.s32.totalorder %s988_s8, %s984_s21 }
 0x2f7   : > { %p986_p10 = pnand %p985_p9, %p1148_p3 }
 0x2f8   : > { %p991_p0 = por %p990_p13, %p989_p12 }
 0x2f9   : > { %p987_p11 = pneg %p986_p10 }
 0x2fb   : > { %p992_p1 = pnand %p991_p0, %p987_p11 }
 0x2fd   : > { %995 = shalt.err (!%p992_p1)
}
 0x2fe   : > { %887 = dma.vmem_to_hbm [thread:$0]  (%p1148_p3), %s656_s15, 128, %s653_s27, %s637_s0   ;;  %vm626_vm4 = vcmask 60416  }
 0x2ff   : > { %s804_s1 = sshll.u32 %s1176_s13, 2 }
 0x300   : > { %s303_s2 = sadd.s32 %s804_s1, %s1171_s12 }
 0x301   : > { %s805_s3 = sshll.u32 %s303_s2, 2 }
 0x302   : > { %s305_s17 = scalar_lea.vmem %s1274_s4, %s805_s3 }
 0x3b2   : > { %v619_v54 = vpop.f32.mrf.mxu0 }
 0x3b3   : > { %v625_v55 = vpack.c.bf16 %v619_v54, %v619_v54 }
 0x3b4   : > { %v883_v56 = vpop.f32.mrf.mxu0 }
 0x3b5   : > { %627 = vst.msk [vmem:[%s305_s17] sm:$0xf] %vm626_vm4, %v625_v55 }
 0x3b6   : > { %v622_v57 = vpop.f32.mrf.mxu0 }
 0x3b8   : > { %v884_v58 = vpop.f32.mrf.mxu0 }
 0x3b9 PF: > { %p893_p2 = scmp.ge.s32.totalorder %s1062_s25, 2  ;;  %s678_s0 = sand.u32 1, %s1034_s18  }
 0x3ba   : > { %s679_s6 = scalar_lea.sflag [#allocation3], %s678_s0 }
 0x3bb   : > { %p890_p3 = pnand %p893_p2, %p1157_p8 }
 0x3bd   : > { %p891_p4 = pneg %p890_p3 }
 0x3bf   : > { %1029 = dma.done.wait (%p891_p4), %s679_s6, 128  }
 0x3c0   : > { %1031 = vsyncadd (%p891_p4), %s679_s6, 4294967168  ;;  %s19_s25 = sadd.s32 1, %s1062_s25   ;;  %s1286_s18 = smov %s1038_s19 }
 0x3c1   : > { %p16_p5 = scmp.ge.s32.totalorder %s19_s25, 10   ;;  %s1287_s19 = smov %s1042_s20 }
 0x3c2   : > { %s1288_s20 = smov %s1166_s11  ;;  %s1289_s21 = smov %s1054_s23 }
 0x3c3   : > { %s1290_s22 = smov %s1058_s24  ;;  %s1291_s23 = smov %s1294_s28 }
 0x3c4   : > { %s1292_s24 = smov %s1298_s29  ;;  %18 = sbr.rel (!%p16_p5) target bundleno = 10 (0xa), region = 96 }
 0x3c9   :  { %684 = vsyncpa [#allocation3], 1 }
 0x3ca   :  { %686 = vsyncpa [#allocation3 + $0x1], 1 }

// kernel: decoder_layer.7
= control target key start
LH: loop header
LB: loop body
LE: loop exit
PB: predicated region body
PF: predicated region fallthrough
CT: control target
= control target key end

     0   :  { %14 = vsyncpa [#allocation3], 0  ;;  %s1478_s0 = inlined_call_operand.vmem [shape: f32[2,8,32], index: 0, kind: input, shape index: {}]   ;;  %s1479_s1 = inlined_call_operand.vmem [shape: f32[2,16,32], index: 1, kind: input, shape index: {}]   ;;  %s1480_s2 = inlined_call_operand.vmem [shape: bf16[4,32,8], index: 2, kind: input, shape index: {}]   ;;  %s1481_s3 = inlined_call_operand.vmem [shape: f32[4,1,8], index: 3, kind: input, shape index: {}]   ;;  %s1482_s4 = inlined_call_operand.vmem [shape: bf16[4,2,32,8], index: 4, kind: input, shape index: {}]   ;;  %s1483_s5 = inlined_call_operand.vmem [shape: f32[4,2,1,8], index: 5, kind: input, shape index: {}]   ;;  %s1484_s6 = inlined_call_operand.vmem [shape: f32[2,1,16], index: 6, kind: input, shape index: {}]   ;;  %s1485_s7 = inlined_call_operand.vmem [shape: bf16[2,4,8,8], index: 7, kind: output, shape index: {0}]   ;;  %s1486_s8 = inlined_call_operand.hbm [shape: f32[2,4,8,16], index: 8, kind: output, shape index: {1}]  }
   0x1   :  { %16 = vsyncpa [#allocation3 + $0x1], 0  ;;  %s1285_s27 = smov 0   ;;  %s1287_s28 = smov 0  }
   0x2   :  { %s1289_s29 = smov 0   ;;  %s1291_s30 = smov 0  }
   0x3   :  { %s1293_s9 = smov 0   ;;  %s1295_s10 = smov 0  }
   0x4   :  { %s1297_s11 = smov 0   ;;  %s1299_s12 = smov 0  }
   0x5 LB: > { %1493 = sst [smem:[#allocation5_spill]] %s1215_s29  ;;  %s967_s13 = sadd.s32 4294967295, %s1235_s12   ;;  %s1235_s12 = sphi %s1299_s12, %s22_s12   ;;  %s1231_s11 = sphi %s1297_s11, %s1508_s11   ;;  %s1227_s10 = sphi %s1295_s10, %s1507_s10   ;;  %s1223_s9 = sphi %s1293_s9, %s1506_s9   ;;  %s1219_s30 = sphi %s1291_s30, %s1505_s30   ;;  %s1215_s29 = sphi %s1289_s29, %s1504_s29   ;;  %s1211_s28 = sphi %s1287_s28, %s1510_s28   ;;  %s1207_s27 = sphi %s1285_s27, %s1509_s27  }
   0x6   : > { %1494 = sst [smem:[#allocation6_spill]] %s1227_s10  ;;  %s968_s14 = sadd.s32 4294967294, %s1235_s12  }
   0x7   : > { %1495 = sst [smem:[#allocation7_spill]] %s1231_s11  ;;  %s31_s15 = sadd.s32 1, %s1227_s10 }
   0x8   : > { %p32_p0 = scmp.ge.s32.totalorder %s31_s15, 4  ;;  %s34_s16 = sadd.s32 1, %s1231_s11 }
   0x9   : > { %p263_p1 = scmp.ne.s32.totalorder %s1215_s29, %s1211_s28  ;;  %p264_p2 = scmp.eq.s32.totalorder %s967_s13, 7 }
   0xa   : > { %s1512_s15 = smov (%p32_p0, %s31_s15), 0  ;;  %s1514_s16 = smov (!%p32_p0, %s34_s16), %s1231_s11 }
   0xb   : > { %1496 = sst [smem:[#allocation8_spill]] %s1512_s15  ;;  %s249_s17 = ssub.s32 %s1227_s10, %s1512_s15 }
   0xc   : > { %p1336_p3 = por %p264_p2, %p263_p1  ;;  %p36_p4 = scmp.ge.s32.totalorder %s1514_s16, 2 }
   0xd   : > { %p269_p5 = scmp.ne.s32.totalorder %s1211_s28, %s1207_s27  ;;  %p270_p6 = scmp.eq.s32.totalorder %s968_s14, 7 }
   0xe   : > { %p971_p7 = scmp.ge.s32.totalorder %s1235_s12, 1  ;;  %s1516_s16 = smov (%p36_p4, %s1514_s16), 0 }
   0xf   : > { %1498 = sst [smem:[#allocation9_spill]] %s1516_s16  ;;  %p1345_p8 = por %p270_p6, %p269_p5 }
  0x10   : > { %p338_p9 = scmp.lt.s32.totalorder %s1235_s12, 9  ;;  %s248_s20 = ssub.s32 %s1231_s11, %s1516_s16 }
  0x11   : > { %s1499_s19 = scalar_select %p1345_p8, 1, 0 }
  0x12   : > { %s253_s21 = sadd.s32 1, %s1215_s29  ;;  %s250_s22 = sor.u32 %s249_s17, %s248_s20 }
  0x13   : > { %1500 = sst [smem:[#allocation10_spill]] %s1499_s19  ;;  %p339_p10 = pnand %p971_p7, %p338_p9 }
  0x14   : > { %p251_p11 = scmp.eq.s32.totalorder %s250_s22, 0  ;;  %p413_p12 = scmp.lt.s32.totalorder (!%p339_p10), %s1219_s30, 3 }
  0x15   : > { %342 = sbr.rel (%p339_p10) target bundleno = 955 (0x3bb), region = 48  ;;  %p404_p13 = scmp.lt.s32.totalorder (!%p339_p10), %s1223_s9, 1 }
  0x16   : > { %s1354_s23 = scalar_select %p251_p11, %s1215_s29, %s253_s21  }
  0x17   : > { %s1239_s17 = smov (!%p339_p10), [#allocation2]  }
  0x18   : > { %1501 = sst [smem:[#allocation11_spill]] %s1354_s23 }
  0x1a   : > { %v1237_v0 = vmov 0.0   ;;  %s1361_s24 = scalar_select %p413_p12, %s1219_s30, 3  ;;  %vm1238_vm0 = vmmov 0   ;;  %vm470_vm1 = vcmask 261120   ;;  %vm658_vm2 = vcmask 64512  }
  0x1b   : > { %1032 = vmatprep.subr.bf16.mxu1 %v1237_v0  ;;  %1024 = vmatprep.subr.bf16.mxu0 %v1237_v0  ;;  %s1368_s25 = scalar_select %p404_p13, %s1223_s9, 1  ;;  %v653_v28 = vlaneseq  ;;  %vm705_vm3 = vcmask 130048  }
  0x1c   : > { %1036 = vmatprep.mubr.msk.bf16.mxu1 %vm1238_vm0, %v1237_v0  ;;  %1028 = vmatprep.mubr.msk.bf16.mxu0 %vm1238_vm0, %v1237_v0  ;;  %s1010_s26 = sshll.u32 %s1361_s24, 5  ;;  %s1009_s13 = sshll.u32 %s1361_s24, 4 }
  0x1d   : > { %s1375_s20 = scalar_lea.vmem %s1482_s4, %s1010_s26  ;;  %s417_s16 = scalar_lea.vmem %s1480_s2, %s1009_s13  ;;  %v654_v31 = vshrl.u32 %v653_v28, 7 }
  0x1e   : > { %v1133_v1 = vld [vmem:[%s1375_s20 + $0x8] sm:$0xff]   ;;  %s1008_s15 = sshll.u32 %s1368_s25, 4  ;;  %v1134_v2 = vld [vmem:[%s1375_s20] sm:$0xff]   ;;  %s973_s29 = sshll.u32 %s1368_s25, 3  ;;  %v1137_v26 = vld [vmem:[%s1375_s20 + $0x18] sm:$0xff]  }
  0x1f   : > { %s412_s23 = scalar_lea.vmem %s1479_s1, %s1008_s15  ;;  %1033 = vmatpush3.bf16.msra.mxu1 %v1133_v1  ;;  %v1135_v3 = vld [vmem:[%s417_s16 + $0x8] sm:$0xff]   ;;  %s407_s26 = scalar_lea.vmem %s1478_s0, %s973_s29  ;;  %v1136_v6 = vld [vmem:[%s417_s16] sm:$0xff]   ;;  %v1138_v27 = vld [vmem:[%s1375_s20 + $0x10] sm:$0xff]   ;;  %v655_v33 = vsub.s32 0, %v654_v31 }
  0x20   : > { %1034 = vmatprep.subr.bf16.mxu1 %v1237_v0  ;;  %v444_v4 = vld [vmem:[%s412_s23] sm:$0xff]  ;;  %v445_v5 = vld [vmem:[%s412_s23 + $0x8] sm:$0xff]  ;;  %1025 = vmatpush3.bf16.msra.mxu0 %v1135_v3  ;;  %s980_s29 = sshll.u32 %s1361_s24, 1  ;;  %s420_s23 = scalar_lea.vmem %s1481_s3, %s1361_s24 }
  0x21   : > { %v442_v7 = vld [vmem:[%s407_s26] sm:$0xff]  ;;  %v446_v8 = vpack.c.bf16 %v445_v5, %v444_v4  ;;  %1026 = vmatprep.subr.bf16.mxu0 %v1237_v0  ;;  %s1404_s15 = scalar_lea.vmem %s1483_s5, %s980_s29  ;;  %s432_s21 = scalar_lea.vmem %s1484_s6, %s1368_s25 }
  0x22   : > { %v443_v9 = vpack.c.bf16 %v442_v7, %v442_v7  ;;  %v987_v11 = vld [vmem:[%s1404_s15] ss:$0 sm:$0xff]  ;;  %v996_v48 = vld [vmem:[%s1404_s15 + $0x1] ss:$0 sm:$0xff]  ;;  %s401_s20 = sand.u32 1, %s1211_s28   ;;  %s1004_s26 = sshll.u32 %s1223_s9, 2 }
  0x23   : > { %1035 = vmatpush3.bf16.msra.mxu1 %v1134_v2  ;;  %v983_v19 = vld [vmem:[%s420_s23] ss:$0 sm:$0xff]  ;;  %s972_s22 = sshll.u32 %s401_s20, 3  ;;  %s789_s29 = sadd.s32 %s1219_s30, %s1004_s26 }
  0x24   : > { %1048 = vmatprep.subr.bf16.mxu1 %v1237_v0  ;;  %1027 = vmatpush3.bf16.msra.mxu0 %v1136_v6  ;;  %v647_v29 = vld [vmem:[%s432_s21] sm:$0x1]  ;;  %s403_s14 = scalar_lea.vmem [#allocation2], %s972_s22  ;;  %s1005_s10 = sshll.u32 %s789_s29, 7 }
  0x25   : > { %1040 = vmatprep.subr.bf16.mxu0 %v1237_v0  ;;  %v1000_v30 = vadd.f32 -1.0, %v647_v29  ;;  %s793_s11 = sshll.u32 %s403_s14, 4  ;;  %s791_s19 = scalar_lea.hbm %s1486_s8, %s1005_s10  ;;  %s794_s11 = int_to_ptr.vmem [resolvable:$true] %s793_s11 }
  0x26   : > { %1037 = vmatmul.mubr.msk.bf16.vlgmr.msra.gmra.mxu1 %vm470_vm1, %v446_v8  ;;  %s775_s23 = scalar_lea.sflag [#allocation3], %s401_s20  ;;  %s1143_s13 = scalar_lea.vmem %s794_s11, 128 }
  0x27   : > { %1050 = vmatprep.mubr.msk.bf16.mxu1 %vm1238_vm0, %v1237_v0  ;;  %1029 = vmatmul.mubr.msk.bf16.vlgmr.msra.gmra.mxu0 %vm470_vm1, %v443_v9  ;;  %v649_v32 = vmul.f32 1e+10, %v1000_v30  ;;  %p1144_p0 = scmp.ne.s32.totalorder %s794_s11, %s1143_s13  ;;  %s1147_s21 = sshll.u32 %s1239_s17, 4  ;;  %s1148_s21 = int_to_ptr.vmem [resolvable:$false] %s1147_s21 }
  0x28   : > { %1044 = vmatprep.mubr.msk.bf16.mxu0 %vm1238_vm0, %v1237_v0  ;;  %1041 = vmatpush3.bf16.msra.mxu0 %v1137_v26  ;;  %s1149_s22 = scalar_lea.vmem %s1148_s21, 256  ;;  %p1150_p4 = scmp.lt.s32.totalorder %s794_s11, %s1148_s21 }
  0x29   : > { %1042 = vmatprep.subr.bf16.mxu0 %v1237_v0  ;;  %v656_v34 = vrot.slane %v649_v32, %v655_v33  ;;  %p1145_p1 = pnand %p1144_p0, %p1336_p3  ;;  %p1151_p5 = scmp.lt.s32.totalorder %s1149_s22, %s1143_s13 }
  0x2b   : > { %p1146_p2 = pneg %p1145_p1  ;;  %p1152_p6 = por %p1151_p5, %p1150_p4 }
  0x2c   : > { %1043 = vmatpush3.bf16.msra.mxu0 %v1138_v27 }
  0x2d   : > { %1054 = vmatprep.subr.bf16.mxu0 %v1237_v0  ;;  %p1153_p7 = pnand %p1152_p6, %p1146_p2 }
  0x2f   : > { %1045 = vmatmul.mubr.msk.bf16.vlgmr.msra.gmra.mxu0 %vm470_vm1, %v446_v8 }
  0x30   : > { %1056 = vmatprep.mubr.msk.bf16.mxu0 %vm1238_vm0, %v1237_v0 }
  0xe6   : > { %v574_v10 = vpop.f32.mrf.mxu1 }
  0xe7   : > { %v508_v13 = vpop.f32.mrf.mxu0  ;;  %v575_v16 = vadd.f32 %v987_v11, %v574_v10 }
  0xe8   : > { %v1038_v12 = vpop.f32.mrf.mxu1  ;;  %v509_v23 = vadd.f32 %v983_v19, %v508_v13 }
  0xe9   : > { %v1030_v15 = vpop.f32.mrf.mxu0 }
  0xea   : > { %v577_v14 = vpop.f32.mrf.mxu1  ;;  %v650_v25 = vpack.c.bf16 %v509_v23, %v509_v23 }
  0xeb   : > { %v578_v17 = vadd.f32 %v987_v11, %v577_v14  ;;  %v511_v20 = vpop.f32.mrf.mxu0 }
  0xec   : > { %v1039_v18 = vpop.f32.mrf.mxu1 }
  0xed   : > { %v651_v21 = vpack.c.bf16 %v578_v17, %v575_v16  ;;  %v1031_v22 = vpop.f32.mrf.mxu0 }
  0xef   : > { %v663_v24 = vsel %vm658_vm2, %v651_v21, 0  ;;  %v640_v41 = vpop.f32.mrf.mxu0 }
  0xf0   : > { %1049 = vmatpush3.bf16.xpose.msra.mxu1 %v663_v24  ;;  %v641_v50 = vadd.f32 %v996_v48, %v640_v41 }
  0xf1   : > { %v1046_v42 = vpop.f32.mrf.mxu0 }
  0xf3   : > { %v643_v49 = vpop.f32.mrf.mxu0 }
  0xf4   : > { %v644_v52 = vadd.f32 %v996_v48, %v643_v49 }
  0xf5   : > { %v1047_v51 = vpop.f32.mrf.mxu0 }
  0xf6   : > { %v719_v53 = vpack.c.bf16 %v644_v52, %v641_v50 }
  0xf7   : > { %1051 = vmatmul.mubr.msk.bf16.vlgmr.msra.gmra.mxu1 %vm658_vm2, %v650_v25 }
  0xf8   : > { %1055 = vmatpush3.bf16.msra.mxu0 %v719_v53 }
 0x1b7   : > { %v699_v35 = vpop.f32.mrf.mxu1 }
 0x1b8   : > { %v700_v36 = vadd.f32 %v699_v35, %v656_v34 }
 0x1b9   : > { %v1052_v37 = vpop.f32.mrf.mxu1 }
 0x1ba   : > { %v706_v38 = vsel %vm705_vm3, %v700_v36, -inf }
 0x1bb   : > { %707 = vmax.xlane.f32.xlu0 %v706_v38  ;;  %v702_v39 = vpop.f32.mrf.mxu1 }
 0x1bd   : > { %v1053_v40 = vpop.f32.mrf.mxu1 }
 0x244   : > { %v708_v43 = vpop.xlane.xlu0 %707 }
 0x245   : > { %v709_v44 = vsub.f32 %v700_v36, %v708_v43 }
 0x247   : > { %v710_v45 = vmul.f32 1.442695, %v709_v44 }
 0x249   : > { %1139 = vpow2.f32 %v710_v45 }
 0x256   : > { %v1140_v46 = vpop.eup %1139 }
 0x257   : > { %v712_v47 = vsel %vm705_vm3, %v1140_v46, 0.0 }
 0x258   : > { %713 = vadd.xlane.f32.xlu0 %v712_v47 }
 0x2e1   : > { %v714_v54 = vpop.xlane.xlu0 %713 }
 0x2e2   : > { %1141 = vrcp.f32 %v714_v54 }
 0x2ef   : > { %v1142_v55 = vpop.eup %1141 }
 0x2f0   : > { %v716_v56 = vmul.f32 %v1142_v55, %v1140_v46 }
 0x2f2   : > { %v718_v57 = vpack.c.bf16 %v716_v56, %v716_v56  ;;  %717 = vst.msk [vmem:[%s403_s14] sm:$0xff] %vm705_vm3, %v716_v56 }
 0x2f4   : > { %1057 = vmatmul.mubr.msk.bf16.vlgmr.msra.gmra.mxu0 %vm705_vm3, %v718_v57 }
 0x2f5   : > { %1156 = shalt.err (!%p1153_p7)
}
 0x2f6   : > { %s1157_s30 = scalar_lea.hbm %s791_s19, 128  ;;  %s1161_s14 = scalar_lea.hbm %s1486_s8, 1024 }
 0x2f7   : > { %p1158_p9 = scmp.ne.s32.totalorder %s791_s19, %s1157_s30  ;;  %p1162_p12 = scmp.lt.s32.totalorder %s791_s19, %s1486_s8 }
 0x2f8   : > { %p1163_p13 = scmp.lt.s32.totalorder %s1161_s14, %s1157_s30 }
 0x2f9   : > { %p1159_p10 = pnand %p1158_p9, %p1336_p3 }
 0x2fa   : > { %p1164_p0 = por %p1163_p13, %p1162_p12 }
 0x2fb   : > { %p1160_p11 = pneg %p1159_p10 }
 0x2fd   : > { %p1165_p1 = pnand %p1164_p0, %p1160_p11 }
 0x2ff   : > { %1168 = shalt.err (!%p1165_p1)
}
 0x300   : > { %1060 = dma.vmem_to_hbm [thread:$0]  (%p1336_p3), %s794_s11, 128, %s791_s19, %s775_s23   ;;  %vm764_vm4 = vcmask 60416  }
 0x301   : > { %s981_s10 = sshll.u32 %s1368_s25, 2 }
 0x302   : > { %s438_s15 = sadd.s32 %s981_s10, %s1361_s24 }
 0x303   : > { %s982_s16 = sshll.u32 %s438_s15, 2 }
 0x304   : > { %s440_s21 = scalar_lea.vmem %s1485_s7, %s982_s16 }
 0x3b4   : > { %v757_v58 = vpop.f32.mrf.mxu0 }
 0x3b5   : > { %v763_v59 = vpack.c.bf16 %v757_v58, %v757_v58 }
 0x3b6   : > { %v1058_v60 = vpop.f32.mrf.mxu0 }
 0x3b7   : > { %765 = vst.msk [vmem:[%s440_s21] sm:$0xf] %vm764_vm4, %v763_v59 }
 0x3b8   : > { %v760_v61 = vpop.f32.mrf.mxu0 }
 0x3ba   : > { %v1059_v62 = vpop.f32.mrf.mxu0 }
 0x3bb PF: > { %p1066_p2 = scmp.ge.s32.totalorder %s1235_s12, 2  ;;  %s816_s11 = sand.u32 1, %s1207_s27  }
 0x3bc   : > { %s817_s24 = scalar_lea.sflag [#allocation3], %s816_s11 }
 0x3bd   : > { %p1063_p3 = pnand %p1066_p2, %p1345_p8 }
 0x3bf   : > { %p1064_p4 = pneg %p1063_p3 }
 0x3c1   : > { %1202 = dma.done.wait (%p1064_p4), %s817_s24, 128  }
 0x3c2   : > { %1204 = vsyncadd (%p1064_p4), %s817_s24, 4294967168  ;;  %s22_s12 = sadd.s32 1, %s1235_s12   ;;  %s1503_s25 = sld [smem:[#allocation5_spill]] }
 0x3c3   : > { %p19_p5 = scmp.ge.s32.totalorder %s22_s12, 10   ;;  %s1504_s29 = sld [smem:[#allocation11_spill]] }
 0x3c4   : > { %s1505_s30 = sld [smem:[#allocation6_spill]]  ;;  %s1509_s27 = smov %s1211_s28 }
 0x3c5   : > { %s1506_s9 = sld [smem:[#allocation7_spill]]  ;;  %21 = sbr.rel (!%p19_p5) target bundleno = 5 (0x5), region = 115 }
 0x3c6   : > { %s1507_s10 = sld [smem:[#allocation8_spill]] }
 0x3c7   : > { %s1508_s11 = sld [smem:[#allocation9_spill]] }
 0x3c8   : > { %s1510_s28 = smov %s1503_s25 }
 0x3ca   :  { %822 = vsyncpa [#allocation3], 1 }
 0x3cb   :  { %824 = vsyncpa [#allocation3 + $0x1], 1 }

// kernel: decoder_layer.9
= control target key start
LH: loop header
LB: loop body
LE: loop exit
PB: predicated region body
PF: predicated region fallthrough
CT: control target
= control target key end

     0   :  { %v348_v1 = vmov 0.0   ;;  %vm349_vm0 = vmmov 0   ;;  %vm43_vm1 = vcmask 261120   ;;  %s443_s0 = inlined_call_operand.vmem [shape: f32[16,32], index: 0, kind: input, shape index: {}]   ;;  %s444_s1 = inlined_call_operand.vmem [shape: bf16[32,64], index: 1, kind: input, shape index: {}]   ;;  %s445_s2 = inlined_call_operand.vmem [shape: f32[1,64], index: 2, kind: input, shape index: {}]   ;;  %s446_s3 = inlined_call_operand.vmem [shape: bf16[64,32], index: 3, kind: input, shape index: {}]   ;;  %s447_s4 = inlined_call_operand.vmem [shape: f32[1,32], index: 4, kind: input, shape index: {}]   ;;  %s448_s5 = inlined_call_operand.vmem [shape: f32[1,32], index: 5, kind: input, shape index: {}]   ;;  %s449_s6 = inlined_call_operand.vmem [shape: f32[1,32], index: 6, kind: input, shape index: {}]   ;;  %s450_s7 = inlined_call_operand.hbm [shape: f32[16,32], index: 7, kind: output, shape index: {}]  }
   0x1   :  { %v316_v0 = vld [vmem:[%s444_s1 + $0x8] sm:$0xff]   ;;  %291 = vmatprep.subr.bf16.mxu0 %v348_v1  ;;  %v317_v2 = vld [vmem:[%s444_s1] sm:$0xff]   ;;  %299 = vmatprep.subr.bf16.mxu1 %v348_v1  ;;  %v318_v5 = vld [vmem:[%s446_s3 + $0x18] sm:$0xff]  }
   0x2   :  { %292 = vmatpush3.bf16.msra.mxu0 %v316_v0  ;;  %295 = vmatprep.mubr.msk.bf16.mxu0 %vm349_vm0, %v348_v1  ;;  %v46_v3 = vld [vmem:[%s443_s0] sm:$0xff]  ;;  %v47_v4 = vld [vmem:[%s443_s0 + $0x8] sm:$0xff] }
   0x3   :  { %293 = vmatprep.subr.bf16.mxu0 %v348_v1  ;;  %307 = vmatprep.mubr.msk.bf16.mxu1 %vm349_vm0, %v348_v1  ;;  %v48_v6 = vpack.c.bf16 %v47_v4, %v46_v3 }
   0x4   :  { %300 = vmatpush3.bf16.msra.mxu1 %v318_v5 }
   0x5   :  { %301 = vmatprep.subr.bf16.mxu1 %v348_v1 }
   0x6   :  { %294 = vmatpush3.bf16.msra.mxu0 %v317_v2 }
   0x7   :  { %12 = vsyncpa [#allocation4], 0  ;;  %v319_v7 = vld [vmem:[%s446_s3 + $0x10] sm:$0xff]   ;;  %v320_v8 = vld [vmem:[%s446_s3 + $0x8] sm:$0xff]   ;;  %vm154_vm2 = vcmask 523264   ;;  %s350_s20 = smov [#allocation3]  }
   0x8   :  { %302 = vmatpush3.bf16.msra.mxu1 %v319_v7  ;;  %v321_v9 = vld [vmem:[%s446_s3] sm:$0xff]   ;;  %s260_s21 = sshll.u32 %s350_s20, 4  ;;  %s261_s21 = int_to_ptr.vmem [resolvable:$true] %s260_s21 }
   0x9   :  { %296 = vmatmul.mubr.msk.bf16.vlgmr.msra.gmra.mxu0 %vm43_vm1, %v48_v6  ;;  %303 = vmatprep.subr.bf16.mxu1 %v348_v1  ;;  %v271_v10 = vld [vmem:[%s447_s4] ss:$0 sm:$0xff]  ;;  %s326_s22 = scalar_lea.vmem %s261_s21, 256  ;;  %p331_p1 = scmp.lt.s32.totalorder %s261_s21, %s261_s21 }
   0xa   :  { %v41_v11 = vadd.f32 %v271_v10, %v46_v3  ;;  %v272_v12 = vld [vmem:[%s445_s2] ss:$0 sm:$0xff]  ;;  %v42_v22 = vadd.f32 %v271_v10, %v47_v4  ;;  %p327_p0 = scmp.ne.s32.totalorder %s261_s21, %s326_s22  ;;  %p332_p2 = scmp.lt.s32.totalorder %s326_s22, %s326_s22 }
   0xb   :  { %v281_v52 = vld [vmem:[%s448_s5] ss:$0 sm:$0xff] }
   0xc   :  { %304 = vmatpush3.bf16.msra.mxu1 %v320_v8  ;;  %44 = vst.msk [vmem:[#allocation2] sm:$0xff] %vm43_vm1, %v41_v11  ;;  %45 = vst.msk [vmem:[#allocation2 + $0x8] sm:$0xff] %vm43_vm1, %v42_v22  ;;  %v282_v54 = vld [vmem:[%s449_s6] ss:$0 sm:$0xff]  ;;  %p333_p3 = por %p332_p2, %p331_p1 }
   0xd   :  { %305 = vmatprep.subr.bf16.mxu1 %v348_v1 }
   0xe   :  { %p334_p4 = pnand %p333_p3, %p327_p0 }
  0x10   :  { %306 = vmatpush3.bf16.msra.mxu1 %v321_v9 }
  0x13   :  { %v119_v23 = vld [vmem:[#allocation2] sm:$0xff]  ;;  %v120_v27 = vld [vmem:[#allocation2 + $0x8] sm:$0xff] }
  0xc9   :  { %v110_v13 = vpop.f32.mrf.mxu0 }
  0xca   :  { %v111_v15 = vadd.f32 %v272_v12, %v110_v13 }
  0xcb   :  { %v297_v14 = vpop.f32.mrf.mxu0 }
  0xcc   :  { %v117_v19 = vmax.f32 %v111_v15, 0.0 }
  0xcd   :  { %v113_v16 = vpop.f32.mrf.mxu0 }
  0xce   :  { %v114_v17 = vadd.f32 %v272_v12, %v113_v16 }
  0xcf   :  { %v298_v18 = vpop.f32.mrf.mxu0 }
  0xd0   :  { %v118_v20 = vmax.f32 %v114_v17, 0.0 }
  0xd2   :  { %v121_v21 = vpack.c.bf16 %v118_v20, %v117_v19 }
  0xd4   :  { %308 = vmatmul.mubr.msk.bf16.vlgmr.msra.gmra.mxu1 %vm154_vm2, %v121_v21 }
 0x194   :  { %v192_v24 = vpop.f32.mrf.mxu1 }
 0x195   :  { %v199_v25 = vadd.f32 %v192_v24, %v119_v23 }
 0x196   :  { %v309_v26 = vpop.f32.mrf.mxu1 }
 0x197   :  { %201 = vst.msk [vmem:[#allocation2] sm:$0xff] %vm43_vm1, %v199_v25 }
 0x198   :  { %v195_v28 = vpop.f32.mrf.mxu1 }
 0x199   :  { %v200_v29 = vadd.f32 %v195_v28, %v120_v27 }
 0x19a   :  { %v310_v30 = vpop.f32.mrf.mxu1 }
 0x19b   :  { %202 = vst.msk [vmem:[#allocation2 + $0x8] sm:$0xff] %vm43_vm1, %v200_v29 }
 0x19e   :  { %v206_v31 = vld [vmem:[#allocation2] sm:$0xff] }
 0x19f   :  { %v208_v32 = vsel %vm43_vm1, %v206_v31, 0.0 }
 0x1a0   :  { %209 = vadd.xlane.f32.xlu0 %v208_v32 }
 0x1a2   :  { %v207_v33 = vld [vmem:[#allocation2 + $0x8] sm:$0xff] }
 0x1a3   :  { %v211_v34 = vsel %vm43_vm1, %v207_v33, 0.0 }
 0x1a4   :  { %212 = vadd.xlane.f32.xlu0 %v211_v34 }
 0x229   :  { %v210_v35 = vpop.xlane.xlu0 %209 }
 0x22a   :  { %v215_v36 = vmul.f32 0.03125, %v210_v35 }
 0x22c   :  { %v217_v37 = vsub.f32 %v206_v31, %v215_v36 }
 0x22d   :  { %v213_v38 = vpop.xlane.xlu0 %212 }
 0x22e   :  { %v216_v39 = vmul.f32 0.03125, %v213_v38  ;;  %v219_v40 = vmul.f32 %v217_v37, %v217_v37 }
 0x230   :  { %v218_v41 = vsub.f32 %v207_v33, %v216_v39  ;;  %v221_v42 = vsel %vm43_vm1, %v219_v40, 0.0 }
 0x231   :  { %222 = vadd.xlane.f32.xlu1 %v221_v42 }
 0x232   :  { %v220_v43 = vmul.f32 %v218_v41, %v218_v41 }
 0x234   :  { %v224_v44 = vsel %vm43_vm1, %v220_v43, 0.0 }
 0x235   :  { %225 = vadd.xlane.f32.xlu1 %v224_v44 }
 0x2ba   :  { %v223_v45 = vpop.xlane.xlu1 %222 }
 0x2bb   :  { %v227_v46 = vmul.f32 0.03125, %v223_v45 }
 0x2bd   :  { %v229_v47 = vadd.f32 1e-05, %v227_v46 }
 0x2be   :  { %v226_v48 = vpop.xlane.xlu1 %225 }
 0x2bf   :  { %322 = vrsqrt.f32 %v229_v47  ;;  %v228_v49 = vmul.f32 0.03125, %v226_v48 }
 0x2c1   :  { %v230_v50 = vadd.f32 1e-05, %v228_v49 }
 0x2c3   :  { %324 = vrsqrt.f32 %v230_v50 }
 0x2cc   :  { %v323_v51 = vpop.eup %322 }
 0x2cd   :  { %v233_v53 = vmul.f32 %v323_v51, %v217_v37 }
 0x2cf   :  { %v242_v55 = vmul.f32 %v281_v52, %v233_v53 }
 0x2d0   :  { %v325_v56 = vpop.eup %324 }
 0x2d1   :  { %v234_v57 = vmul.f32 %v325_v56, %v218_v41  ;;  %v251_v58 = vadd.f32 %v282_v54, %v242_v55 }
 0x2d3   :  { %v243_v59 = vmul.f32 %v281_v52, %v234_v57  ;;  %253 = vst.msk [vmem:[#allocation3] sm:$0xff] %vm43_vm1, %v251_v58 }
 0x2d5   :  { %v252_v60 = vadd.f32 %v282_v54, %v243_v59 }
 0x2d7   :  { %254 = vst.msk [vmem:[#allocation3 + $0x8] sm:$0xff] %vm43_vm1, %v252_v60 }
 0x2d8   :  { %337 = shalt.err (!%p334_p4)
}
 0x2d9   :  { %s351_s5 = smov 128   ;;  %s352_s6 = smov 8  }
 0x2da   :  { %266 = dma.vmem_to_hbm [thread:$0]  %s261_s21, 256, %s450_s7, [#allocation4], %s351_s5, %s351_s5, %s352_s6  }
 0x2db   :  { %346 = dma.done.wait [#allocation4], 256  }
 0x2dc   :  { %347 = vsyncadd [#allocation4], 4294967040 }
 0x2dd   :  { %270 = vsyncpa [#allocation4], 1 }

</bundles_post_ra>
